<compile_context>
chip_gen: v6e
topology: v6e:2x2x1
jax: 0.10.0
libtpu: 0.0.40
codegen_flags: <defaults>
</compile_context>

<pallas_src>
import jax
import jax.numpy as jnp
from jax import lax
from jax.experimental import pallas as pl
from jax.experimental.pallas import tpu as pltpu

PACK = 128          # batch rows packed into one lane-dense row
F = 4               # feature count of the model


def credit_score_kernel(x_ref, w_ref, o_ref):
    # x_ref: (TILE, PACK*F) f32   packed activations
    # w_ref: (PACK*F, PACK) f32   block-diagonal weights (10x scale folded in)
    # o_ref: (TILE, PACK)   f32   lane-dense scores
    z = jnp.dot(
        x_ref[...], w_ref[...],
        preferred_element_type=jnp.float32,
        precision=lax.Precision.HIGHEST,
    ) - 5.0
    # sigmoid: exp on the EUP; exact divide keeps full f32 accuracy.
    o_ref[...] = 1.0 / (1.0 + jnp.exp(-z))


def credit_score_forward(x, w, *, tile_rows=512):
    """x: (B, F) float32, w: (1, F) float32 -> (B, 1) float32."""
    B, f = x.shape
    assert f == F and w.shape == (1, F)
    x = x.astype(jnp.float32)

    # ---- layout plumbing (free row-major reshapes + tiny constants) ----
    bp = pl.cdiv(B, PACK)                            # packed rows needed
    if bp <= tile_rows:
        tile_rows = bp                               # single full-array block
        bp_pad = bp
    else:
        tile_rows = max(8, (tile_rows // 8) * 8)     # (8, 128) sublane rule
        bp_pad = pl.cdiv(bp, tile_rows) * tile_rows
    b_pad = bp_pad * PACK
    if b_pad != B:
        x = jnp.pad(x, ((0, b_pad - B), (0, 0)))
    xp = x.reshape(bp_pad, PACK * F)                 # (Bp, 512), free reshape

    # Block-diagonal weights with the 10x scale constant-folded in:
    #   W_big[4*j + f, j] = 10 * w[f]
    w_scaled = (10.0 * w.reshape(F)).astype(jnp.float32)
    w_big = jnp.kron(jnp.eye(PACK, dtype=jnp.float32), w_scaled.reshape(F, 1))

    grid = (bp_pad // tile_rows,)
    out = pl.pallas_call(
        credit_score_kernel,
        out_shape=jax.ShapeDtypeStruct((bp_pad, PACK), jnp.float32),
        grid_spec=pltpu.PrefetchScalarGridSpec(
            num_scalar_prefetch=0,
            grid=grid,
            in_specs=[
                pl.BlockSpec((tile_rows, PACK * F), lambda i: (i, 0)),
                pl.BlockSpec((PACK * F, PACK), lambda i: (0, 0)),  # resident
            ],
            out_specs=pl.BlockSpec((tile_rows, PACK), lambda i: (i, 0)),
        ),
        compiler_params=pltpu.CompilerParams(
            dimension_semantics=("parallel",)),
    )(xp, w_big)

    return out.reshape(b_pad, 1)[:B]


if __name__ == "__main__":
    key = jax.random.PRNGKey(0)
    w = jnp.array([[0.3, 0.2, 0.2, 0.3]], dtype=jnp.float32)

    def ref_fn(x):
        # Pure-JAX reference, same semantics as the PyTorch forward.
        return 1.0 / (1.0 + jnp.exp(-(10.0 * (x @ w.T) - 5.0)))

    # Case 1: small batch (pads to one 128-row packed tile).
    B1 = 8
    x1 = jax.random.uniform(key, (B1, F), dtype=jnp.float32)
    out1 = jax.block_until_ready(credit_score_forward(x1, w))
    assert out1.shape == (B1, 1)
    assert jnp.allclose(out1, ref_fn(x1), atol=1e-5, rtol=1e-5)

    # Case 2: multi-block pipelined grid (small tile forces 2 grid steps).
    B2 = 2048
    x2 = jax.random.uniform(jax.random.PRNGKey(0), (B2, F), dtype=jnp.float32)
    out2 = jax.block_until_ready(credit_score_forward(x2, w, tile_rows=8))
    assert out2.shape == (B2, 1)
    assert jnp.allclose(out2, ref_fn(x2), atol=1e-5, rtol=1e-5)

    print("KERNEL_OK")
</pallas_src>

<mosaic_0001>
module attributes {stable_mosaic.version = 11 : i64} {
  func.func @credit_score_kernel(%arg0: i32, %arg1: memref<1x512xf32, #tpu.memory_space<vmem>>, %arg2: memref<512x128xf32, #tpu.memory_space<vmem>>, %arg3: memref<1x128xf32, #tpu.memory_space<vmem>>) attributes {dimension_semantics = [#tpu.dimension_semantics<parallel>], iteration_bounds = array<i64: 1>, scalar_prefetch = 0 : i64, scratch_operands = 0 : i64, tpu.core_type = #tpu.core_type<tc>, window_params = [{transform_indices = @transform_0, window_bounds = array<i64: 1, 512>}, {pipeline_mode = #tpu.pipeline_mode<synchronous>, transform_indices = @transform_1, window_bounds = array<i64: 512, 128>}, {transform_indices = @transform_2, window_bounds = array<i64: 1, 128>}]} {
    %c0 = arith.constant 0 : index
    %c0_0 = arith.constant 0 : index
    %0 = vector.load %arg1[%c0, %c0_0] : memref<1x512xf32, #tpu.memory_space<vmem>>, vector<1x512xf32>
    %c0_1 = arith.constant 0 : index
    %c0_2 = arith.constant 0 : index
    %1 = vector.load %arg2[%c0_1, %c0_2] : memref<512x128xf32, #tpu.memory_space<vmem>>, vector<512x128xf32>
    %cst = arith.constant dense<0.000000e+00> : vector<1x128xf32>
    %2 = tpu.matmul %0, %1, %cst {dimension_numbers = #tpu.dot_dimension_numbers<[1], [0], [0], [1], [0, 0, 1, 1], [], []>, precision = #tpu.contract_precision<fp32>} : vector<1x512xf32>, vector<512x128xf32>, vector<1x128xf32> -> vector<1x128xf32>
    %cst_3 = arith.constant 5.000000e+00 : f32
    %3 = vector.broadcast %cst_3 : f32 to vector<1x128xf32>
    %4 = arith.subf %2, %3 : vector<1x128xf32>
    %cst_4 = arith.constant 0.000000e+00 : f32
    %5 = vector.broadcast %cst_4 : f32 to vector<1x128xf32>
    %6 = arith.subf %5, %4 : vector<1x128xf32>
    %7 = math.exp %6 : vector<1x128xf32>
    %cst_5 = arith.constant 1.000000e+00 : f32
    %8 = vector.broadcast %cst_5 : f32 to vector<1x128xf32>
    %9 = arith.addf %8, %7 : vector<1x128xf32>
    %cst_6 = arith.constant 1.000000e+00 : f32
    %10 = vector.broadcast %cst_6 : f32 to vector<1x128xf32>
    %11 = arith.divf %10, %9 : vector<1x128xf32>
    %c0_7 = arith.constant 0 : index
    %c0_8 = arith.constant 0 : index
    %12 = vector.load %arg3[%c0_7, %c0_8] : memref<1x128xf32, #tpu.memory_space<vmem>>, vector<1x128xf32>
    tpu.vector_store %arg3[%c0_7, %c0_8], %11 {strides = array<i32>} : memref<1x128xf32, #tpu.memory_space<vmem>>, vector<1x128xf32>,
    return
  }
  func.func @transform_0(%arg0: i32) -> (i32, i32) {
    %c0_i32 = arith.constant 0 : i32
    %c0_i32_0 = arith.constant 0 : i32
    return %arg0, %c0_i32 : i32, i32
  }
  func.func @transform_1(%arg0: i32) -> (i32, i32) {
    %c0_i32 = arith.constant 0 : i32
    %c0_i32_0 = arith.constant 0 : i32
    %c0_i32_1 = arith.constant 0 : i32
    return %c0_i32, %c0_i32_0 : i32, i32
  }
  func.func @transform_2(%arg0: i32) -> (i32, i32) {
    %c0_i32 = arith.constant 0 : i32
    %c0_i32_0 = arith.constant 0 : i32
    return %arg0, %c0_i32 : i32, i32
  }
}

</mosaic_0001>

<bundles_post_ra>
// kernel: tpu_custom_call.1
= control target key start
LH: loop header
LB: loop body
LE: loop exit
PB: predicated region body
PF: predicated region fallthrough
CT: control target
= control target key end

     0   :  { %7 = vsyncpa [#allocation3], 0  ;;  %s3606_s0 = inlined_call_operand.hbm [shape: f32[1,512], index: 0, kind: input, shape index: {}]   ;;  %s3607_s1 = inlined_call_operand.hbm [shape: f32[512,128], index: 1, kind: input, shape index: {}]   ;;  %s3608_s2 = inlined_call_operand.hbm [shape: f32[1,128], index: 2, kind: output, shape index: {}]  }
   0x1   :  { %8 = vsyncpa [#allocation6], 0 }
   0x2   :  { %9 = vsyncpa [#allocation4], 0  ;;  %s2368_s9 = smov [#allocation2]   ;;  %s2369_s11 = smov [#allocation5]  }
   0x3   :  { %s16_s10 = sshll.u32 %s2368_s9, 4  ;;  %s25_s12 = sshll.u32 %s2369_s11, 4  ;;  %s17_s10 = int_to_ptr.vmem [resolvable:$true] %s16_s10  ;;  %s26_s12 = int_to_ptr.vmem [resolvable:$true] %s25_s12 }
   0x4   :  { %s2310_s13 = scalar_lea.vmem %s17_s10, 64  ;;  %p2315_p1 = scmp.lt.s32.totalorder %s17_s10, %s17_s10 }
   0x5   :  { %p2311_p0 = scmp.ne.s32.totalorder %s17_s10, %s2310_s13  ;;  %p2316_p2 = scmp.lt.s32.totalorder %s2310_s13, %s2310_s13 }
   0x7   :  { %p2317_p3 = por %p2316_p2, %p2315_p1 }
   0x9   :  { %p2318_p4 = pnand %p2317_p3, %p2311_p0 }
   0xb   :  { %2321 = shalt.err (!%p2318_p4)
}
   0xc   :  { %19 = dma.hbm_to_vmem [thread:$0]  %s3606_s0, 64, %s17_s10, [#allocation3]  }
   0xd   :  { %s2330_s16 = scalar_lea.vmem %s26_s12, 8192  ;;  %p2335_p6 = scmp.lt.s32.totalorder %s26_s12, %s26_s12 }
   0xe   :  { %p2331_p5 = scmp.ne.s32.totalorder %s26_s12, %s2330_s16  ;;  %p2336_p7 = scmp.lt.s32.totalorder %s2330_s16, %s2330_s16 }
  0x10   :  { %p2337_p8 = por %p2336_p7, %p2335_p6 }
  0x12   :  { %p2338_p9 = pnand %p2337_p8, %p2331_p5 }
  0x14   :  { %2341 = shalt.err (!%p2338_p9)
}
  0x15   :  { %s2370_s17 = smov 128   ;;  %s2371_s18 = smov 8  }
  0x16   :  { %31 = dma.hbm_to_vmem [thread:$0]  %s3607_s1, 8192, %s26_s12, [#allocation6], %s2370_s17, %s2370_s17, %s2371_s18  }
  0x17   :  { %2362 = dma.done.wait [#allocation3], 64  }
  0x18   :  { %2363 = vsyncadd [#allocation3], 4294967232 }
  0x19   :  { %2364 = dma.done.wait [#allocation6], 8192  }
  0x1a   :  { %2365 = vsyncadd [#allocation6], 4294959104  ;;  %v104_v0 = vlaneseq  ;;  %v70_v2 = vld [vmem:[#allocation5 + $0xf8] sm:$0xff]  ;;  %v69_v4 = vld [vmem:[#allocation5 + $0xf0] sm:$0xff]  ;;  %s2372_s0 = smov [#allocation7]  }
  0x1b   :  { %v54_v3 = vld [vmem:[#allocation5 + $0x78] sm:$0xff]  ;;  %v2398_v7 = vand.u32 4294901760, %v70_v2  ;;  %v2402_v9 = vand.u32 4294901760, %v69_v4  ;;  %v53_v10 = vld [vmem:[#allocation5 + $0x70] sm:$0xff]  ;;  %v68_v11 = vld [vmem:[#allocation5 + $0xe8] sm:$0xff]  ;;  %s1862_s1 = sshll.u32 %s2372_s0, 4  ;;  %s1863_s1 = int_to_ptr.vmem [resolvable:$true] %s1862_s1 }
  0x1c   :  { %v2394_v1 = vshrl.u32 %v104_v0, 7  ;;  %v2400_v8 = vand.u32 4294901760, %v54_v3  ;;  %v52_v12 = vld [vmem:[#allocation5 + $0x68] sm:$0xff]  ;;  %v2404_v13 = vand.u32 4294901760, %v53_v10  ;;  %v2406_v14 = vand.u32 4294901760, %v68_v11  ;;  %v67_v16 = vld [vmem:[#allocation5 + $0xe0] sm:$0xff]  ;;  %p2347_p11 = scmp.lt.s32.totalorder %s1863_s1, %s1863_s1 }
  0x1d   :  { %v2408_v15 = vand.u32 4294901760, %v52_v12  ;;  %v51_v17 = vld [vmem:[#allocation5 + $0x60] sm:$0xff]  ;;  %v66_v18 = vld [vmem:[#allocation5 + $0xd8] sm:$0xff]  ;;  %1873 = vmatprep.subr.mxu0 %v2398_v7  ;;  %v2411_v19 = vand.u32 4294901760, %v67_v16  ;;  %v2418_v22 = vsub.f32 %v70_v2, %v2398_v7  ;;  %v2422_v24 = vld [vmem:[#allocation5 + $0xd0] sm:$0xff]  ;;  %v2437_v29 = vsub.f32 %v69_v4, %v2402_v9  ;;  %s2342_s21 = scalar_lea.vmem %s1863_s1, 16 }
  0x1e   :  { %3743 = vst [vmem:[#allocation11_spill] sm:$0xff] %v2394_v1  ;;  %v2413_v20 = vand.u32 4294901760, %v51_v17  ;;  %v2415_v21 = vand.u32 4294901760, %v66_v18  ;;  %v2420_v23 = vld [vmem:[#allocation5 + $0x58] sm:$0xff]  ;;  %v2424_v25 = vld [vmem:[#allocation5 + $0x50] sm:$0xff]  ;;  %1874 = vmatpush3.msra.mxu0 %v2400_v8  ;;  %v2431_v27 = vsub.f32 %v54_v3, %v2400_v8  ;;  %v2434_v28 = vand.u32 4294901760, %v2422_v24  ;;  %p2343_p10 = scmp.ne.s32.totalorder %s1863_s1, %s2342_s21 }
  0x1f   :  { %v2428_v26 = vand.u32 4294901760, %v2420_v23  ;;  %v2439_v30 = vld [vmem:[#allocation5 + $0xc8] sm:$0xff]  ;;  %v2443_v32 = vld [vmem:[#allocation5 + $0xc0] sm:$0xff]  ;;  %1875 = vmatprep.subr.mxu0 %v2402_v9  ;;  %v3620_v33 = vand.u32 4294901760, %v2418_v22  ;;  %v2448_v34 = vand.u32 4294901760, %v2424_v25  ;;  %v2451_v35 = vsub.f32 %v53_v10, %v2404_v13  ;;  %v2489_v50 = vld [vmem:[#allocation5 + $0xb8] sm:$0xff] }
  0x20   :  { %v2441_v31 = vld [vmem:[#allocation5 + $0x48] sm:$0xff]  ;;  %v2454_v36 = vand.u32 4294901760, %v2439_v30  ;;  %1876 = vmatpush3.msra.mxu0 %v2404_v13  ;;  %v3618_v37 = vand.u32 4294901760, %v2431_v27  ;;  %v3617_v38 = vand.u32 4294901760, %v2437_v29  ;;  %v2460_v39 = vsub.f32 %v68_v11, %v2406_v14  ;;  %v2465_v41 = vld [vmem:[#allocation5 + $0x40] sm:$0xff]  ;;  %v2499_v55 = vld [vmem:[#allocation5 + $0x38] sm:$0xff] }
  0x21   :  { %3744 = vst [vmem:[#allocation12_spill] sm:$0xff] %v2448_v34  ;;  %v2463_v40 = vand.u32 4294901760, %v2441_v31  ;;  %1877 = vmatprep.subr.mxu0 %v2406_v14  ;;  %v352_v42 = vsub.f32 %v2418_v22, %v3620_v33  ;;  %v3615_v43 = vand.u32 4294901760, %v2451_v35  ;;  %v2473_v44 = vsub.f32 %v52_v12, %v2408_v15  ;;  %v2506_v60 = vld [vmem:[#allocation5 + $0xb0] sm:$0xff]  ;;  %v2530_v12 = vld [vmem:[#allocation5 + $0xa8] sm:$0xff]  ;;  %s2346_s22 = scalar_lea.vmem %s1863_s1, 32 }
  0x22   :  { %3745 = vst [vmem:[#allocation13_spill] sm:$0xff] %v2454_v36  ;;  %v2476_v45 = vand.u32 4294901760, %v2443_v32  ;;  %1878 = vmatpush3.msra.mxu0 %v2408_v15  ;;  %v240_v46 = vsub.f32 %v2431_v27, %v3618_v37  ;;  %v359_v47 = vsub.f32 %v2437_v29, %v3617_v38  ;;  %v3613_v48 = vand.u32 4294901760, %v2460_v39  ;;  %v2518_v2 = vld [vmem:[#allocation5 + $0x30] sm:$0xff]  ;;  %v2608_v38 = vld [vmem:[#allocation5 + $0x18] sm:$0xff]  ;;  %p2348_p12 = scmp.lt.s32.totalorder %s2346_s22, %s2342_s21 }
  0x23   :  { %3746 = vst [vmem:[#allocation14_spill] sm:$0xff] %v2463_v40  ;;  %v2487_v49 = vsub.f32 %v67_v16, %v2411_v19  ;;  %1879 = vmatprep.subr.mxu0 %v2411_v19  ;;  %v353_v51 = vand.u32 4294901760, %v352_v42  ;;  %v247_v52 = vsub.f32 %v2451_v35, %v3615_v43  ;;  %v3612_v53 = vand.u32 4294901760, %v2473_v44  ;;  %v2621_v33 = vld [vmem:[#allocation5 + $0x90] sm:$0xff] }
  0x24   :  { %3747 = vst [vmem:[#allocation15_spill] sm:$0xff] %v2476_v45  ;;  %v2497_v54 = vand.u32 4294901760, %v2465_v41  ;;  %1880 = vmatpush3.msra.mxu0 %v2413_v20  ;;  %v241_v56 = vand.u32 4294901760, %v240_v46  ;;  %v360_v57 = vand.u32 4294901760, %v359_v47  ;;  %v366_v58 = vsub.f32 %v2460_v39, %v3613_v48  ;;  %v2631_v6 = vld [vmem:[#allocation5 + $0x10] sm:$0xff]  ;;  %p2349_p13 = por %p2348_p12, %p2347_p11 }
  0x25   :  { %v3610_v59 = vand.u32 4294901760, %v2487_v49  ;;  %1881 = vmatprep.subr.mxu0 %v2415_v21  ;;  %1908 = vmatprep.subr.mxu1 %v353_v51  ;;  %v248_v61 = vand.u32 4294901760, %v247_v52  ;;  %v254_v62 = vsub.f32 %v2473_v44, %v3612_v53  ;;  %v2513_v63 = vsub.f32 %v51_v17, %v2413_v20  ;;  %v2587_v53 = vld [vmem:[#allocation5 + $0x20] sm:$0xff] }
  0x26   :  { %3748 = vst [vmem:[#allocation16_spill] sm:$0xff] %v2497_v54  ;;  %v2516_v0 = vand.u32 4294901760, %v2489_v50  ;;  %1882 = vmatpush3.msra.mxu0 %v2428_v26  ;;  %1909 = vmatpush3.msra.mxu1 %v241_v56  ;;  %v367_v3 = vand.u32 4294901760, %v366_v58  ;;  %v2525_v10 = vsub.f32 %v66_v18, %v2415_v21  ;;  %v2528_v11 = vand.u32 4294901760, %v2499_v55  ;;  %v2541_v18 = vld [vmem:[#allocation5 + $0x28] sm:$0xff]  ;;  %p2350_p0 = pnand %p2349_p13, %p2343_p10 }
  0x27   :  { %v373_v4 = vsub.f32 %v2487_v49, %v3610_v59  ;;  %1883 = vmatprep.subr.mxu0 %v2434_v28  ;;  %1910 = vmatprep.subr.mxu1 %v360_v57  ;;  %v255_v16 = vand.u32 4294901760, %v254_v62  ;;  %v3609_v17 = vand.u32 4294901760, %v2513_v63  ;;  %v2536_v42 = vsub.f32 %v2420_v23, %v2428_v26 }
  0x28   :  { %3749 = vst [vmem:[#allocation17_spill] sm:$0xff] %v2516_v0  ;;  %3750 = vst [vmem:[#allocation18_spill] sm:$0xff] %v2528_v11  ;;  %v2539_v46 = vand.u32 4294901760, %v2506_v60  ;;  %1884 = vmatpush3.msra.mxu0 %v2448_v34  ;;  %1911 = vmatpush3.msra.mxu1 %v248_v61  ;;  %v3611_v51 = vand.u32 4294901760, %v2525_v10  ;;  %v2547_v52 = vsub.f32 %v2422_v24, %v2434_v28  ;;  %v2550_v56 = vand.u32 4294901760, %v2518_v2  ;;  %v2564_v24 = vld [vmem:[#allocation5 + $0xa0] sm:$0xff] }
  0x29   :  { %v374_v47 = vand.u32 4294901760, %v373_v4  ;;  %1885 = vmatprep.subr.mxu0 %v2454_v36  ;;  %1912 = vmatprep.subr.mxu1 %v367_v3  ;;  %v261_v23 = vsub.f32 %v2513_v63, %v3609_v17  ;;  %v3614_v57 = vand.u32 4294901760, %v2536_v42  ;;  %v2559_v58 = vsub.f32 %v2424_v25, %v2448_v34 }
  0x2a   :  { %3751 = vst [vmem:[#allocation19_spill] sm:$0xff] %v2539_v46  ;;  %3752 = vst [vmem:[#allocation20_spill] sm:$0xff] %v2550_v56  ;;  %v2562_v61 = vand.u32 4294901760, %v2530_v12  ;;  %1886 = vmatpush3.msra.mxu0 %v2463_v40  ;;  %1913 = vmatpush3.msra.mxu1 %v255_v16  ;;  %v380_v62 = vsub.f32 %v2525_v10, %v3611_v51  ;;  %v3616_v3 = vand.u32 4294901760, %v2547_v52  ;;  %v2576_v25 = vand.u32 4294901760, %v2541_v18 }
  0x2b   :  { %v2573_v4 = vsub.f32 %v2439_v30, %v2454_v36  ;;  %1887 = vmatprep.subr.mxu0 %v2476_v45  ;;  %1914 = vmatprep.subr.mxu1 %v374_v47  ;;  %v262_v17 = vand.u32 4294901760, %v261_v23  ;;  %v268_v16 = vsub.f32 %v2536_v42, %v3614_v57  ;;  %v3619_v59 = vand.u32 4294901760, %v2559_v58  ;;  %v2597_v57 = vld [vmem:[#allocation5 + $0x98] sm:$0xff] }
  0x2c   :  { %3753 = vst [vmem:[#allocation21_spill] sm:$0xff] %v2562_v61  ;;  %3754 = vst [vmem:[#allocation22_spill] sm:$0xff] %v2576_v25  ;;  %v2585_v51 = vsub.f32 %v2441_v31, %v2463_v40  ;;  %1888 = vmatpush3.msra.mxu0 %v2497_v54  ;;  %v381_v30 = vand.u32 4294901760, %v380_v62  ;;  %v387_v47 = vsub.f32 %v2547_v52, %v3616_v3  ;;  %v2595_v48 = vand.u32 4294901760, %v2564_v24  ;;  %v2711_v36 = vld [vmem:[#allocation2] sm:$0xf] }
  0x2d   :  { %v3621_v23 = vand.u32 4294901760, %v2573_v4  ;;  %1915 = vmatpush3.msra.mxu1 %v262_v17  ;;  %1889 = vmatprep.subr.mxu0 %v2516_v0  ;;  %v269_v31 = vand.u32 4294901760, %v268_v16  ;;  %v275_v43 = vsub.f32 %v2559_v58, %v3619_v59  ;;  %v2606_v3 = vsub.f32 %v2443_v32, %v2476_v45  ;;  %3768 = vst [vmem:[#allocation32_spill] sm:$0xff] %v2711_v36 }
  0x2e   :  { %3755 = vst [vmem:[#allocation23_spill] sm:$0xff] %v2595_v48  ;;  %v3622_v62 = vand.u32 4294901760, %v2585_v51  ;;  %1916 = vmatprep.subr.mxu1 %v381_v30  ;;  %1890 = vmatpush3.msra.mxu0 %v2528_v11  ;;  %v388_v37 = vand.u32 4294901760, %v387_v47  ;;  %v2615_v16 = vand.u32 4294901760, %v2587_v53  ;;  %v2619_v59 = vsub.f32 %v2465_v41, %v2497_v54 }
  0x2f   :  { %v394_v17 = vsub.f32 %v2573_v4, %v3621_v23  ;;  %1917 = vmatpush3.msra.mxu1 %v269_v31  ;;  %1891 = vmatprep.subr.mxu0 %v2539_v46  ;;  %v276_v32 = vand.u32 4294901760, %v275_v43  ;;  %v2629_v23 = vand.u32 4294901760, %v2597_v57  ;;  %v2637_v43 = vsub.f32 %v2489_v50, %v2516_v0 }
  0x30   :  { %3756 = vst [vmem:[#allocation24_spill] sm:$0xff] %v2615_v16  ;;  %v282_v30 = vsub.f32 %v2585_v51, %v3622_v62  ;;  %1918 = vmatprep.subr.mxu1 %v388_v37  ;;  %1892 = vmatpush3.msra.mxu0 %v2550_v56  ;;  %v3629_v31 = vand.u32 4294901760, %v2619_v59  ;;  %v2640_v5 = vand.u32 4294901760, %v2608_v38  ;;  %v2642_v62 = vld [vmem:[#allocation5 + $0x88] sm:$0xff]  ;;  %v3759_v37 = vand.u32 4294901760, %v2606_v3 }
  0x31   :  { %3757 = vst [vmem:[#allocation25_spill] sm:$0xff] %v2629_v23  ;;  %v395_v41 = vand.u32 4294901760, %v394_v17  ;;  %1919 = vmatpush3.msra.mxu1 %v276_v32  ;;  %1893 = vmatprep.subr.mxu0 %v2562_v61  ;;  %v2650_v17 = vsub.f32 %v2499_v55, %v2528_v11  ;;  %v2653_v50 = vand.u32 4294901760, %v2621_v33  ;;  %v2662_v0 = vsub.f32 %v2506_v60, %v2539_v46  ;;  %v2667_v55 = vld [vmem:[#allocation5 + $0x8] sm:$0xff]  ;;  %v2678_v60 = vld [vmem:[#allocation5 + $0x80] sm:$0xff] }
  0x32   :  { %3758 = vst [vmem:[#allocation26_spill] sm:$0xff] %v2640_v5  ;;  %v283_v47 = vand.u32 4294901760, %v282_v30  ;;  %v401_v54 = vsub.f32 %v2606_v3, %v3759_v37  ;;  %1894 = vmatpush3.msra.mxu0 %v2576_v25  ;;  %v289_v32 = vsub.f32 %v2619_v59, %v3629_v31  ;;  %v2665_v37 = vand.u32 4294901760, %v2631_v6 }
  0x33   :  { %1920 = vmatprep.subr.mxu1 %v395_v41  ;;  %3760 = vst [vmem:[#allocation27_spill] sm:$0xff] %v2662_v0  ;;  %1895 = vmatprep.subr.mxu0 %v2595_v48  ;;  %v2673_v31 = vsub.f32 %v2518_v2, %v2550_v56  ;;  %v2676_v30 = vand.u32 4294901760, %v2642_v62  ;;  %v3763_v45 = vand.u32 4294901760, %v2637_v43  ;;  %v2687_v11 = vsub.f32 %v2530_v12, %v2562_v61 }
  0x34   :  { %3761 = vst [vmem:[#allocation28_spill] sm:$0xff] %v2665_v37  ;;  %1921 = vmatpush3.msra.mxu1 %v283_v47  ;;  %v402_v41 = vand.u32 4294901760, %v401_v54  ;;  %1896 = vmatpush3.msra.mxu0 %v2615_v16  ;;  %v290_v46 = vand.u32 4294901760, %v289_v32  ;;  %v3765_v2 = vand.u32 4294901760, %v2650_v17  ;;  %v2695_v32 = vand.u32 4294901760, %v2667_v55  ;;  %v2701_v54 = vld [vmem:[#allocation5] sm:$0xff] }
  0x35   :  { %3762 = vst [vmem:[#allocation29_spill] sm:$0xff] %v2676_v30  ;;  %v408_v47 = vsub.f32 %v2637_v43, %v3763_v45  ;;  %3764 = vst [vmem:[#allocation30_spill] sm:$0xff] %v2687_v11  ;;  %1897 = vmatprep.subr.mxu0 %v2629_v23  ;;  %v2699_v45 = vsub.f32 %v2541_v18, %v2576_v25  ;;  %v2709_v40 = vand.u32 4294901760, %v2678_v60  ;;  %v3769_v18 = vand.u32 4294901760, %v2673_v31 }
  0x36   :  { %1922 = vmatprep.subr.mxu1 %v402_v41  ;;  %v296_v56 = vsub.f32 %v2650_v17, %v3765_v2  ;;  %3766 = vst [vmem:[#allocation31_spill] sm:$0xff] %v2695_v32  ;;  %1898 = vmatpush3.msra.mxu0 %v2640_v5  ;;  %v3767_v41 = vand.u32 4294901760, %v2662_v0  ;;  %v3650_v2 = vand.u32 4294901760, %v2687_v11  ;;  %v2720_v25 = vsub.f32 %v2564_v24, %v2595_v48 }
  0x37   :  { %1923 = vmatpush3.msra.mxu1 %v290_v46  ;;  %v409_v12 = vand.u32 4294901760, %v408_v47  ;;  %1899 = vmatprep.subr.mxu0 %v2653_v50  ;;  %v303_v46 = vsub.f32 %v2673_v31, %v3769_v18  ;;  %v2731_v18 = vsub.f32 %v2587_v53, %v2615_v16  ;;  %v3770_v24 = vand.u32 4294901760, %v2699_v45 }
  0x38   :  { %v415_v61 = vsub.f32 %v2662_v0, %v3767_v41  ;;  %v297_v34 = vand.u32 4294901760, %v296_v56  ;;  %1900 = vmatpush3.msra.mxu0 %v2665_v37  ;;  %v422_v56 = vsub.f32 %v2687_v11, %v3650_v2  ;;  %v2727_v0 = vand.u32 4294901760, %v2701_v54 }
  0x39   :  { %1924 = vmatprep.subr.mxu1 %v409_v12  ;;  %v304_v47 = vand.u32 4294901760, %v303_v46  ;;  %1901 = vmatprep.subr.mxu0 %v2676_v30  ;;  %v3771_v48 = vsub.s32 1, %v2394_v1  ;;  %v3772_v46 = vsub.s32 0, %v2394_v1  ;;  %v2758_v53 = vsub.f32 %v2608_v38, %v2640_v5 }
  0x3a   :  { %v416_v41 = vand.u32 4294901760, %v415_v61  ;;  %1925 = vmatpush3.msra.mxu1 %v297_v34  ;;  %v310_v61 = vsub.f32 %v2699_v45, %v3770_v24  ;;  %v423_v11 = vand.u32 4294901760, %v422_v56  ;;  %1902 = vmatpush3.msra.mxu0 %v2695_v32  ;;  %v2745_v34 = vsub.f32 %v2597_v57, %v2629_v23 }
  0x3b   :  { %v111_v2 = vrot.slane %v2711_v36, %v3771_v48  ;;  %v107_v24 = vrot.slane %v2711_v36, %v3772_v46  ;;  %1903 = vmatprep.subr.mxu0 %v2709_v40  ;;  %v3773_v48 = vand.u32 4294901760, %v2720_v25  ;;  %v3775_v57 = vand.u32 4294901760, %v2731_v18 }
  0x3c   :  { %1926 = vmatprep.subr.mxu1 %v416_v41  ;;  %v311_v12 = vand.u32 4294901760, %v310_v61  ;;  %1904 = vmatpush3.msra.mxu0 %v2727_v0  ;;  %v3777_v1 = vand.u32 4294901760, %v2745_v34 }
  0x3d   :  { %1927 = vmatpush3.msra.mxu1 %v304_v47  ;;  %v429_v41 = vsub.f32 %v2720_v25, %v3773_v48  ;;  %v2754_v56 = vand.u32 4294901760, %v111_v2  ;;  %v317_v47 = vsub.f32 %v2731_v18, %v3775_v57  ;;  %v2765_v46 = vand.u32 4294901760, %v107_v24  ;;  %1943 = vmatprep.subr.mxu0 %v2418_v22 }
  0x3e   :  { %1928 = vmatprep.subr.mxu1 %v423_v11  ;;  %v2769_v48 = vsub.f32 %v2621_v33, %v2653_v50  ;;  %v3659_v11 = vand.u32 4294901760, %v2758_v53  ;;  %v2778_v57 = vsub.f32 %v2631_v6, %v2665_v37  ;;  %v436_v5 = vsub.f32 %v2745_v34, %v3777_v1 }
  0x3f   :  { %3774 = vst [vmem:[#allocation33_spill] sm:$0xff] %v2754_v56  ;;  %3776 = vst [vmem:[#allocation34_spill] sm:$0xff] %v2765_v46  ;;  %1929 = vmatpush3.msra.mxu1 %v311_v12  ;;  %v430_v36 = vand.u32 4294901760, %v429_v41  ;;  %v2772_v38 = vsub.f32 %v111_v2, %v2754_v56  ;;  %v318_v61 = vand.u32 4294901760, %v317_v47  ;;  %v2784_v33 = vsub.f32 %v107_v24, %v2765_v46 }
  0x40   :  { %v3662_v12 = vand.u32 4294901760, %v2769_v48  ;;  %461 = vmatprep.mubr.f32.mxu1 %v2754_v56  ;;  %v324_v6 = vsub.f32 %v2758_v53, %v3659_v11  ;;  %v2795_v47 = vsub.f32 %v2642_v62, %v2676_v30  ;;  %v437_v1 = vand.u32 4294901760, %v436_v5 }
  0x41   :  { %1930 = vmatprep.subr.mxu1 %v430_v36  ;;  %v3673_v24 = vand.u32 4294901760, %v2784_v33  ;;  %v2803_v2 = vsub.f32 %v2667_v55, %v2695_v32  ;;  %v3778_v11 = vand.u32 4294901760, %v2772_v38  ;;  %v3779_v62 = vand.u32 4294901760, %v2778_v57 }
  0x42   :  { %1931 = vmatpush3.msra.mxu1 %v318_v61  ;;  %v443_v36 = vsub.f32 %v2769_v48, %v3662_v12  ;;  %v325_v56 = vand.u32 4294901760, %v324_v6  ;;  %v3672_v5 = vand.u32 4294901760, %v2795_v47  ;;  %v2818_v32 = vsub.f32 %v2678_v60, %v2709_v40 }
  0x43   :  { %v223_v41 = vsub.f32 %v2772_v38, %v3778_v11  ;;  %v331_v61 = vsub.f32 %v2778_v57, %v3779_v62  ;;  %1932 = vmatprep.subr.mxu1 %v437_v1  ;;  %v229_v12 = vsub.f32 %v2784_v33, %v3673_v24  ;;  %v3671_v55 = vand.u32 4294901760, %v2803_v2 }
  0x44   :  { %v444_v30 = vand.u32 4294901760, %v443_v36  ;;  %1933 = vmatpush3.msra.mxu1 %v325_v56  ;;  %v450_v62 = vsub.f32 %v2795_v47, %v3672_v5  ;;  %v2825_v1 = vsub.f32 %v2701_v54, %v2727_v0  ;;  %v3670_v60 = vand.u32 4294901760, %v2818_v32  ;;  %v3794_v5 = vld [vmem:[#allocation23_spill] sm:$0xff] }
  0x45   :  { %v224_v11 = vand.u32 4294901760, %v223_v41  ;;  %v332_v6 = vand.u32 4294901760, %v331_v61  ;;  %v230_v37 = vand.u32 4294901760, %v229_v12  ;;  %v338_v36 = vsub.f32 %v2803_v2, %v3671_v55  ;;  %v3793_v55 = vld [vmem:[#allocation22_spill] sm:$0xff] }
  0x46   :  { %3780 = vst [vmem:[#allocation35_spill] sm:$0xff] %v2825_v1  ;;  %1934 = vmatprep.subr.mxu1 %v444_v30  ;;  %v451_v56 = vand.u32 4294901760, %v450_v62  ;;  %v3669_v41 = vand.u32 4294901760, %v2825_v1  ;;  %v457_v54 = vsub.f32 %v2818_v32, %v3670_v60  ;;  %v3783_v62 = vld [vmem:[#allocation13_spill] sm:$0xff]  ;;  %v3795_v24 = vand.u32 4294901760, %v2418_v22 }
  0x47   :  { %225 = vmatprep.mubr.f32.mxu0 %v224_v11  ;;  %1935 = vmatpush3.msra.mxu1 %v332_v6  ;;  %v339_v61 = vand.u32 4294901760, %v338_v36  ;;  %v3782_v6 = vld [vmem:[#allocation12_spill] sm:$0xff]  ;;  %v3784_v36 = vld [vmem:[#allocation30_spill] sm:$0xff]  ;;  %v3792_v60 = vld [vmem:[#allocation21_spill] sm:$0xff]  ;;  %v3802_v22 = vand.u32 4294901760, %v2460_v39 }
  0x48   :  { %231 = vmatmul.mubr.f32.vlgmr.msra.gmra.mxu0 %v230_v37  ;;  %1936 = vmatprep.subr.mxu1 %v451_v56  ;;  %v345_v30 = vsub.f32 %v2825_v1, %v3669_v41  ;;  %v458_v12 = vand.u32 4294901760, %v457_v54  ;;  %v3781_v37 = vld [vmem:[#allocation27_spill] sm:$0xff]  ;;  %v3785_v56 = vld [vmem:[#allocation14_spill] sm:$0xff]  ;;  %v3787_v54 = vld [vmem:[#allocation16_spill] sm:$0xff] }
  0x49   :  { %1944 = vmatpush3.msra.mxu0 %v2431_v27  ;;  %1937 = vmatpush3.msra.mxu1 %v339_v61  ;;  %v3786_v61 = vld [vmem:[#allocation15_spill] sm:$0xff]  ;;  %v3791_v41 = vld [vmem:[#allocation20_spill] sm:$0xff] }
  0x4a   :  { %1945 = vmatprep.subr.mxu0 %v2437_v29  ;;  %v346_v11 = vand.u32 4294901760, %v345_v30  ;;  %598 = vmatprep.mubr.f32.mxu0 %v2772_v38  ;;  %v3788_v30 = vld [vmem:[#allocation17_spill] sm:$0xff] }
  0x4b   :  { %1946 = vmatpush3.msra.mxu0 %v2451_v35  ;;  %1938 = vmatprep.subr.mxu1 %v458_v12  ;;  %v3789_v12 = vld [vmem:[#allocation18_spill] sm:$0xff] }
  0x4c   :  { %1947 = vmatprep.subr.mxu0 %v2460_v39  ;;  %1939 = vmatpush3.msra.mxu1 %v346_v11  ;;  %v3790_v11 = vld [vmem:[#allocation19_spill] sm:$0xff]  ;;  %v3808_v39 = vand.u32 4294901760, %v2784_v33 }
  0x4d   :  { %1948 = vmatpush3.msra.mxu0 %v2473_v44  ;;  %463 = vmatmul.mubr.f32.vlgmr.msra.gmra.mxu1 %v2765_v46  ;;  %v3796_v46 = vld [vmem:[#allocation26_spill] sm:$0xff] }
  0x4e   :  { %1949 = vmatprep.subr.mxu0 %v2487_v49  ;;  %1978 = vmatprep.subr.mxu1 %v2398_v7 }
  0x4f   :  { %1950 = vmatpush3.msra.mxu0 %v2513_v63  ;;  %1979 = vmatpush3.msra.mxu1 %v2400_v8 }
  0x50   :  { %1951 = vmatprep.subr.mxu0 %v2525_v10  ;;  %1980 = vmatprep.subr.mxu1 %v2402_v9 }
  0x51   :  { %1952 = vmatpush3.msra.mxu0 %v2536_v42  ;;  %1981 = vmatpush3.msra.mxu1 %v2404_v13 }
  0x52   :  { %1953 = vmatprep.subr.mxu0 %v2547_v52  ;;  %1982 = vmatprep.subr.mxu1 %v2406_v14 }
  0x53   :  { %1954 = vmatpush3.msra.mxu0 %v2559_v58  ;;  %1983 = vmatpush3.msra.mxu1 %v2408_v15 }
  0x54   :  { %1955 = vmatprep.subr.mxu0 %v2573_v4  ;;  %1984 = vmatprep.subr.mxu1 %v2411_v19 }
  0x55   :  { %1956 = vmatpush3.msra.mxu0 %v2585_v51  ;;  %1985 = vmatpush3.msra.mxu1 %v2413_v20 }
  0x56   :  { %1957 = vmatprep.subr.mxu0 %v2606_v3  ;;  %1986 = vmatprep.subr.mxu1 %v2415_v21 }
  0x57   :  { %1958 = vmatpush3.msra.mxu0 %v2619_v59  ;;  %1987 = vmatpush3.msra.mxu1 %v2428_v26 }
  0x58   :  { %1959 = vmatprep.subr.mxu0 %v2637_v43  ;;  %1988 = vmatprep.subr.mxu1 %v2434_v28 }
  0x59   :  { %1960 = vmatpush3.msra.mxu0 %v2650_v17  ;;  %1989 = vmatpush3.msra.mxu1 %v3782_v6 }
  0x5a   :  { %1961 = vmatprep.subr.mxu0 %v3781_v37  ;;  %1990 = vmatprep.subr.mxu1 %v3783_v62 }
  0x5b   :  { %1962 = vmatpush3.msra.mxu0 %v2673_v31  ;;  %1991 = vmatpush3.msra.mxu1 %v3785_v56 }
  0x5c   :  { %1963 = vmatprep.subr.mxu0 %v3784_v36  ;;  %1992 = vmatprep.subr.mxu1 %v3786_v61 }
  0x5d   :  { %1964 = vmatpush3.msra.mxu0 %v2699_v45  ;;  %1993 = vmatpush3.msra.mxu1 %v3787_v54 }
  0x5e   :  { %1965 = vmatprep.subr.mxu0 %v2720_v25  ;;  %1994 = vmatprep.subr.mxu1 %v3788_v30 }
  0x5f   :  { %1966 = vmatpush3.msra.mxu0 %v2731_v18  ;;  %1995 = vmatpush3.msra.mxu1 %v3789_v12 }
  0x60   :  { %1967 = vmatprep.subr.mxu0 %v2745_v34  ;;  %1996 = vmatprep.subr.mxu1 %v3790_v11 }
  0x61   :  { %1968 = vmatpush3.msra.mxu0 %v2758_v53  ;;  %1997 = vmatpush3.msra.mxu1 %v3791_v41 }
  0x62   :  { %1969 = vmatprep.subr.mxu0 %v2769_v48  ;;  %1998 = vmatprep.subr.mxu1 %v3792_v60 }
  0x63   :  { %1970 = vmatpush3.msra.mxu0 %v2778_v57  ;;  %1999 = vmatpush3.msra.mxu1 %v3793_v55  ;;  %v3797_v55 = vand.u32 4294901760, %v2431_v27  ;;  %v3804_v27 = vand.u32 4294901760, %v2473_v44  ;;  %v3810_v44 = vand.u32 4294901760, %v2536_v42  ;;  %v3814_v42 = vand.u32 4294901760, %v2585_v51 }
  0x64   :  { %1971 = vmatprep.subr.mxu0 %v2795_v47  ;;  %2000 = vmatprep.subr.mxu1 %v3794_v5  ;;  %v3798_v5 = vand.u32 4294901760, %v2437_v29  ;;  %v3805_v29 = vand.u32 4294901760, %v2487_v49  ;;  %v3811_v49 = vand.u32 4294901760, %v2547_v52  ;;  %v85_v52 = vld [vmem:[#allocation5 + $0x170] sm:$0xff]  ;;  %v3817_v51 = vand.u32 4294901760, %v2637_v43 }
  0x65   :  { %1972 = vmatpush3.msra.mxu0 %v2803_v2  ;;  %2001 = vmatpush3.msra.mxu1 %v2615_v16  ;;  %v3799_v16 = vld [vmem:[#allocation28_spill] sm:$0xff] }
  0x66   :  { %1973 = vmatprep.subr.mxu0 %v2818_v32  ;;  %2002 = vmatprep.subr.mxu1 %v2629_v23  ;;  %v3801_v23 = vld [vmem:[#allocation29_spill] sm:$0xff] }
  0x67   :  { %1974 = vmatpush3.msra.mxu0 %v2825_v1  ;;  %2003 = vmatpush3.msra.mxu1 %v3796_v46  ;;  %v3800_v1 = vand.u32 4294901760, %v2451_v35  ;;  %v3806_v35 = vand.u32 4294901760, %v2772_v38 }
  0x68   :  { %601 = vmatmul.mubr.f32.vlgmr.msra.gmra.mxu0 %v2784_v33  ;;  %2013 = vmatprep.subr.mxu0 %v3795_v24  ;;  %v3803_v24 = vld [vmem:[#allocation31_spill] sm:$0xff] }
  0x69   :  { %2014 = vmatpush3.msra.mxu0 %v3797_v55  ;;  %2004 = vmatprep.subr.mxu1 %v2653_v50  ;;  %v3809_v55 = vand.u32 4294901760, %v2525_v10  ;;  %v3813_v10 = vand.u32 4294901760, %v2573_v4  ;;  %v2955_v4 = vand.u32 4294901760, %v85_v52  ;;  %v83_v33 = vld [vmem:[#allocation5 + $0x160] sm:$0xff] }
  0x6a   :  { %2015 = vmatprep.subr.mxu0 %v3798_v5  ;;  %2005 = vmatpush3.msra.mxu1 %v3799_v16  ;;  %v3807_v5 = vand.u32 4294901760, %v2513_v63  ;;  %v3812_v63 = vand.u32 4294901760, %v2559_v58 }
  0x6b   :  { %2016 = vmatpush3.msra.mxu0 %v3800_v1  ;;  %2006 = vmatprep.subr.mxu1 %v3801_v23  ;;  %3818 = vst [vmem:[#allocation27_spill] sm:$0xff] %v2955_v4 }
  0x6c   :  { %2017 = vmatprep.subr.mxu0 %v3802_v22  ;;  %2007 = vmatpush3.msra.mxu1 %v3803_v24  ;;  %v3826_v22 = vand.u32 4294901760, %v2699_v45 }
  0x6d   :  { %2018 = vmatpush3.msra.mxu0 %v3804_v27  ;;  %2008 = vmatprep.subr.mxu1 %v2709_v40  ;;  %v82_v27 = vld [vmem:[#allocation5 + $0x158] sm:$0xff] }
  0x6e   :  { %2019 = vmatprep.subr.mxu0 %v3805_v29  ;;  %2009 = vmatpush3.msra.mxu1 %v2727_v0 }
  0x6f   :  { %705 = vmatprep.mubr.f32.mxu1 %v3806_v35  ;;  %2020 = vmatpush3.msra.mxu0 %v3807_v5  ;;  %v3829_v35 = vand.u32 4294901760, %v2731_v18 }
  0x70   :  { %709 = vmatmul.mubr.f32.vlgmr.msra.gmra.mxu1 %v3808_v39  ;;  %2021 = vmatprep.subr.mxu0 %v3809_v55  ;;  %v3832_v39 = vand.u32 4294901760, %v2745_v34  ;;  %v3835_v34 = vand.u32 4294901760, %v2769_v48 }
  0x71   :  { %2048 = vmatprep.subr.mxu1 %v2398_v7  ;;  %2022 = vmatpush3.msra.mxu0 %v3810_v44  ;;  %v86_v7 = vld [vmem:[#allocation5 + $0x178] sm:$0xff]  ;;  %v3833_v44 = vand.u32 4294901760, %v2758_v53  ;;  %v3837_v53 = vand.u32 4294901760, %v2778_v57 }
  0x72   :  { %2049 = vmatpush3.msra.mxu1 %v2400_v8  ;;  %2023 = vmatprep.subr.mxu0 %v3811_v49  ;;  %v102_v8 = vld [vmem:[#allocation5 + $0x1f8] sm:$0xff]  ;;  %v2948_v58 = vand.u32 4294901760, %v86_v7  ;;  %v3017_v49 = vand.u32 4294901760, %v82_v27 }
  0x73   :  { %2050 = vmatprep.subr.mxu1 %v2402_v9  ;;  %2024 = vmatpush3.msra.mxu0 %v3812_v63  ;;  %v3815_v9 = vand.u32 4294901760, %v2606_v3  ;;  %v100_v3 = vld [vmem:[#allocation5 + $0x1e8] sm:$0xff]  ;;  %v97_v63 = vld [vmem:[#allocation5 + $0x1d0] sm:$0xff] }
  0x74   :  { %2051 = vmatpush3.msra.mxu1 %v2404_v13  ;;  %2025 = vmatprep.subr.mxu0 %v3813_v10  ;;  %v3816_v13 = vand.u32 4294901760, %v2619_v59  ;;  %v84_v59 = vld [vmem:[#allocation5 + $0x168] sm:$0xff]  ;;  %v2969_v38 = vsub.f32 %v86_v7, %v2948_v58  ;;  %3834 = vst [vmem:[#allocation17_spill] sm:$0xff] %v3017_v49 }
  0x75   :  { %2052 = vmatprep.subr.mxu1 %v2406_v14  ;;  %2026 = vmatpush3.msra.mxu0 %v3814_v42  ;;  %v101_v14 = vld [vmem:[#allocation5 + $0x1f0] sm:$0xff]  ;;  %v2979_v1 = vand.u32 4294901760, %v84_v59  ;;  %v80_v42 = vld [vmem:[#allocation5 + $0x148] sm:$0xff] }
  0x76   :  { %2053 = vmatpush3.msra.mxu1 %v2408_v15  ;;  %2027 = vmatprep.subr.mxu0 %v3815_v9  ;;  %v2953_v15 = vand.u32 4294901760, %v102_v8  ;;  %v2963_v43 = vand.u32 4294901760, %v101_v14  ;;  %v3838_v9 = vand.u32 4294901760, %v2795_v47  ;;  %v3841_v47 = vld [vmem:[#allocation22_spill] sm:$0xff] }
  0x77   :  { %2054 = vmatprep.subr.mxu1 %v2411_v19  ;;  %2028 = vmatpush3.msra.mxu0 %v3816_v13  ;;  %v3819_v19 = vand.u32 4294901760, %v2650_v17  ;;  %v2971_v17 = vand.u32 4294901760, %v100_v3  ;;  %3825 = vst [vmem:[#allocation30_spill] sm:$0xff] %v2979_v1  ;;  %v3010_v18 = vsub.f32 %v84_v59, %v2979_v1 }
  0x78   :  { %2055 = vmatpush3.msra.mxu1 %v2413_v20  ;;  %2029 = vmatprep.subr.mxu0 %v3817_v51  ;;  %v3820_v20 = vand.u32 4294901760, %v3781_v37  ;;  %3821 = vst [vmem:[#allocation12_spill] sm:$0xff] %v2963_v43  ;;  %v98_v37 = vld [vmem:[#allocation5 + $0x1d8] sm:$0xff]  ;;  %v2993_v29 = vsub.f32 %v101_v14, %v2963_v43  ;;  %v3840_v51 = vand.u32 4294901760, %v2803_v2 }
  0x79   :  { %2056 = vmatprep.subr.mxu1 %v2415_v21  ;;  %2030 = vmatpush3.msra.mxu0 %v3819_v19  ;;  %v3822_v21 = vand.u32 4294901760, %v2673_v31  ;;  %3823 = vst [vmem:[#allocation13_spill] sm:$0xff] %v2971_v17  ;;  %v99_v31 = vld [vmem:[#allocation5 + $0x1e0] sm:$0xff]  ;;  %v3000_v5 = vand.u32 4294901760, %v98_v37  ;;  %v3683_v14 = vand.u32 4294901760, %v3010_v18 }
  0x7a   :  { %2057 = vmatpush3.msra.mxu1 %v2428_v26  ;;  %2031 = vmatprep.subr.mxu0 %v3820_v20  ;;  %v3824_v26 = vand.u32 4294901760, %v3784_v36  ;;  %v3827_v36 = vand.u32 4294901760, %v2720_v25  ;;  %v2998_v45 = vand.u32 4294901760, %v99_v31  ;;  %v3682_v25 = vand.u32 4294901760, %v2969_v38  ;;  %v3843_v19 = vld [vmem:[#allocation11_spill] sm:$0xff] }
  0x7b   :  { %2058 = vmatprep.subr.mxu1 %v2434_v28  ;;  %2032 = vmatpush3.msra.mxu0 %v3822_v21  ;;  %v2977_v28 = vsub.f32 %v85_v52, %v2955_v4  ;;  %3831 = vst [vmem:[#allocation16_spill] sm:$0xff] %v3000_v5  ;;  %v3681_v10 = vand.u32 4294901760, %v2993_v29  ;;  %v3041_v52 = vsub.f32 %v98_v37, %v3000_v5  ;;  %v3844_v20 = vand.u32 4294901760, %v2818_v32  ;;  %v3845_v21 = vld [vmem:[#allocation23_spill] sm:$0xff] }
  0x7c   :  { %2059 = vmatpush3.msra.mxu1 %v3782_v6  ;;  %2033 = vmatprep.subr.mxu0 %v3824_v26  ;;  %v2982_v6 = vsub.f32 %v102_v8, %v2953_v15  ;;  %3830 = vst [vmem:[#allocation15_spill] sm:$0xff] %v2998_v45  ;;  %v3034_v48 = vsub.f32 %v2969_v38, %v3682_v25  ;;  %v79_v37 = vld [vmem:[#allocation5 + $0x140] sm:$0xff]  ;;  %v77_v25 = vld [vmem:[#allocation5 + $0x130] sm:$0xff] }
  0x7d   :  { %2060 = vmatprep.subr.mxu1 %v3783_v62  ;;  %2034 = vmatpush3.msra.mxu0 %v3826_v22  ;;  %v2990_v62 = vand.u32 4294901760, %v83_v33  ;;  %v3680_v55 = vand.u32 4294901760, %v2977_v28  ;;  %v3038_v8 = vsub.f32 %v99_v31, %v2998_v45  ;;  %v95_v31 = vld [vmem:[#allocation5 + $0x1c0] sm:$0xff] }
  0x7e   :  { %2061 = vmatpush3.msra.mxu1 %v3785_v56  ;;  %2035 = vmatprep.subr.mxu0 %v3827_v36  ;;  %v81_v56 = vld [vmem:[#allocation5 + $0x150] sm:$0xff]  ;;  %v78_v36 = vld [vmem:[#allocation5 + $0x138] sm:$0xff] }
  0x7f   :  { %2062 = vmatprep.subr.mxu1 %v3786_v61  ;;  %3828 = vst [vmem:[#allocation14_spill] sm:$0xff] %v2990_v62  ;;  %2036 = vmatpush3.msra.mxu0 %v3829_v35  ;;  %v3004_v61 = vsub.f32 %v100_v3, %v2971_v17  ;;  %v3026_v7 = vand.u32 4294901760, %v81_v56  ;;  %v3056_v13 = vsub.f32 %v2977_v28, %v3680_v55  ;;  %v3065_v3 = vand.u32 4294901760, %v80_v42  ;;  %v3850_v35 = vld [vmem:[#allocation33_spill] sm:$0xff] }
  0x80   :  { %2063 = vmatpush3.msra.mxu1 %v3787_v54  ;;  %2037 = vmatprep.subr.mxu0 %v3832_v39  ;;  %v3684_v54 = vand.u32 4294901760, %v2982_v6  ;;  %v3114_v55 = vand.u32 4294901760, %v79_v37  ;;  %v3152_v39 = vand.u32 4294901760, %v77_v25 }
  0x81   :  { %2064 = vmatprep.subr.mxu1 %v3788_v30  ;;  %2038 = vmatpush3.msra.mxu0 %v3833_v44  ;;  %v3023_v30 = vsub.f32 %v83_v33, %v2990_v62  ;;  %3836 = vst [vmem:[#allocation18_spill] sm:$0xff] %v3026_v7  ;;  %3842 = vst [vmem:[#allocation20_spill] sm:$0xff] %v3065_v3  ;;  %v3074_v33 = vsub.f32 %v2993_v29, %v3681_v10  ;;  %v3116_v10 = vand.u32 4294901760, %v78_v36 }
  0x82   :  { %2065 = vmatpush3.msra.mxu1 %v3789_v12  ;;  %2039 = vmatprep.subr.mxu0 %v3835_v34  ;;  %v96_v12 = vld [vmem:[#allocation5 + $0x1c8] sm:$0xff]  ;;  %v3049_v57 = vsub.f32 %v2982_v6, %v3684_v54  ;;  %v3077_v2 = vsub.f32 %v81_v56, %v3026_v7  ;;  %v3686_v56 = vand.u32 4294901760, %v3038_v8  ;;  %v3092_v34 = vld [vmem:[#allocation5 + $0x1b8] sm:$0xff]  ;;  %3855 = vst [vmem:[#allocation29_spill] sm:$0xff] %v3114_v55  ;;  %v3130_v54 = vld [vmem:[#allocation5 + $0x1b0] sm:$0xff] }
  0x83   :  { %2066 = vmatprep.subr.mxu1 %v3790_v11  ;;  %2040 = vmatpush3.msra.mxu0 %v3837_v53  ;;  %v3679_v11 = vand.u32 4294901760, %v3004_v61  ;;  %v3079_v26 = vand.u32 4294901760, %v96_v12  ;;  %v3685_v22 = vand.u32 4294901760, %v3023_v30  ;;  %v3687_v53 = vand.u32 4294901760, %v3041_v52  ;;  %3856 = vst [vmem:[#allocation31_spill] sm:$0xff] %v3116_v10  ;;  %3858 = vst [vmem:[#allocation11_spill] sm:$0xff] %v3152_v39 }
  0x84   :  { %2067 = vmatpush3.msra.mxu1 %v3791_v41  ;;  %2041 = vmatprep.subr.mxu0 %v3838_v9  ;;  %v3051_v41 = vand.u32 4294901760, %v97_v63  ;;  %3846 = vst [vmem:[#allocation21_spill] sm:$0xff] %v3077_v2  ;;  %v3851_v9 = vld [vmem:[#allocation24_spill] sm:$0xff] }
  0x85   :  { %2068 = vmatprep.subr.mxu1 %v3792_v60  ;;  %2042 = vmatpush3.msra.mxu0 %v3840_v51  ;;  %v3063_v60 = vsub.f32 %v82_v27, %v3017_v49  ;;  %3847 = vst [vmem:[#allocation26_spill] sm:$0xff] %v3079_v26  ;;  %v3848_v27 = vld [vmem:[#allocation35_spill] sm:$0xff]  ;;  %v3089_v44 = vsub.f32 %v3004_v61, %v3679_v11  ;;  %v3852_v51 = vld [vmem:[#allocation34_spill] sm:$0xff]  ;;  %v3112_v11 = vand.u32 4294901760, %v95_v31 }
  0x86   :  { %3839 = vst [vmem:[#allocation19_spill] sm:$0xff] %v3051_v41  ;;  %2069 = vmatpush3.msra.mxu1 %v3841_v47  ;;  %2043 = vmatprep.subr.mxu0 %v3844_v20  ;;  %v3849_v32 = vand.u32 4294901760, %v3848_v27  ;;  %v3105_v27 = vsub.f32 %v97_v63, %v3051_v41  ;;  %v3138_v20 = vsub.f32 %v3038_v8, %v3686_v56  ;;  %v3155_v47 = vld [vmem:[#allocation5 + $0x1a8] sm:$0xff]  ;;  %v75_v56 = vld [vmem:[#allocation5 + $0x120] sm:$0xff] }
  0x87   :  { %2070 = vmatprep.subr.mxu1 %v3845_v21  ;;  %875 = vmatprep.mubr.f32.mxu0 %v3850_v35  ;;  %v3102_v21 = vsub.f32 %v3010_v18, %v3683_v14  ;;  %3854 = vst [vmem:[#allocation28_spill] sm:$0xff] %v3112_v11  ;;  %v3690_v14 = vand.u32 4294901760, %v3063_v60  ;;  %v3146_v63 = vsub.f32 %v96_v12, %v3079_v26 }
  0x88   :  { %2044 = vmatpush3.msra.mxu0 %v3849_v32  ;;  %2071 = vmatpush3.msra.mxu1 %v3851_v9  ;;  %v3853_v32 = vld [vmem:[#allocation25_spill] sm:$0xff]  ;;  %v3110_v9 = vsub.f32 %v80_v42, %v3065_v3  ;;  %v3127_v42 = vand.u32 4294901760, %v3092_v34  ;;  %v3160_v12 = vsub.f32 %v79_v37, %v3114_v55  ;;  %v3169_v59 = vsub.f32 %v95_v31, %v3112_v11 }
  0x89   :  { %877 = vmatmul.mubr.f32.vlgmr.msra.gmra.mxu0 %v3852_v51  ;;  %2072 = vmatprep.subr.mxu1 %v3853_v32  ;;  %v3124_v32 = vsub.f32 %v3023_v30, %v3685_v22  ;;  %v3143_v22 = vsub.f32 %v3041_v52, %v3687_v53  ;;  %v3166_v53 = vand.u32 4294901760, %v3130_v54  ;;  %v3177_v37 = vsub.f32 %v3063_v60, %v3690_v14 }
  0x8a   :  { %2083 = vmatprep.subr.mxu0 %v2953_v15  ;;  %2073 = vmatpush3.msra.mxu1 %v3796_v46  ;;  %3857 = vst [vmem:[#allocation22_spill] sm:$0xff] %v3127_v42  ;;  %v114_v46 = vsub.s32 2, %v3843_v19  ;;  %v3862_v14 = vand.u32 4294901760, %v3105_v27 }
  0x8b   :  { %2084 = vmatpush3.msra.mxu0 %v2948_v58  ;;  %2074 = vmatprep.subr.mxu1 %v2653_v50  ;;  %3860 = vst [vmem:[#allocation35_spill] sm:$0xff] %v3166_v53  ;;  %v76_v50 = vld [vmem:[#allocation5 + $0x128] sm:$0xff] }
  0x8c   :  { %2085 = vmatprep.subr.mxu0 %v2963_v43  ;;  %2075 = vmatpush3.msra.mxu1 %v3799_v16  ;;  %v3163_v16 = vsub.f32 %v78_v36, %v3116_v10  ;;  %v3194_v36 = vsub.f32 %v3105_v27, %v3862_v14  ;;  %v3209_v14 = vand.u32 4294901760, %v75_v56 }
  0x8d   :  { %2086 = vmatpush3.msra.mxu0 %v2955_v4  ;;  %2076 = vmatprep.subr.mxu1 %v3801_v23  ;;  %v3186_v23 = vand.u32 4294901760, %v3155_v47  ;;  %v3867_v4 = vld [vmem:[#allocation32_spill] sm:$0xff] }
  0x8e   :  { %2087 = vmatprep.subr.mxu0 %v2971_v17  ;;  %3859 = vst [vmem:[#allocation23_spill] sm:$0xff] %v3163_v16  ;;  %2077 = vmatpush3.msra.mxu1 %v3803_v24  ;;  %v1236_v24 = vand.u32 4294901760, %v3138_v20  ;;  %v3863_v20 = vand.u32 4294901760, %v3077_v2  ;;  %v74_v17 = vld [vmem:[#allocation5 + $0x118] sm:$0xff]  ;;  %3865 = vst [vmem:[#allocation34_spill] sm:$0xff] %v3209_v14 }
  0x8f   :  { %2088 = vmatpush3.msra.mxu0 %v2979_v1  ;;  %2078 = vmatprep.subr.mxu1 %v2709_v40  ;;  %3861 = vst [vmem:[#allocation33_spill] sm:$0xff] %v3186_v23  ;;  %v3197_v40 = vsub.f32 %v77_v25, %v3152_v39  ;;  %v91_v1 = vld [vmem:[#allocation5 + $0x1a0] sm:$0xff]  ;;  %v3873_v25 = vand.u32 4294901760, %v3056_v13  ;;  %v3877_v13 = vand.u32 4294901760, %v3089_v44 }
  0x90   :  { %2089 = vmatprep.subr.mxu0 %v2998_v45  ;;  %2079 = vmatpush3.msra.mxu1 %v2727_v0  ;;  %v3202_v31 = vsub.f32 %v3077_v2, %v3863_v20  ;;  %v3204_v45 = vand.u32 4294901760, %v76_v50  ;;  %v3868_v20 = vand.u32 4294901760, %v3049_v57  ;;  %v1131_v2 = vand.u32 4294901760, %v3177_v37 }
  0x91   :  { %979 = vmatprep.mubr.f32.mxu1 %v3850_v35  ;;  %2090 = vmatpush3.msra.mxu0 %v2990_v62  ;;  %v3866_v35 = vsub.s32 3, %v3843_v19  ;;  %v3869_v62 = vand.u32 4294901760, %v3110_v9  ;;  %v3226_v0 = vsub.f32 %v3092_v34, %v3127_v42  ;;  %v115_v19 = vrot.slane %v3867_v4, %v114_v46 }
  0x92   :  { %3864 = vst [vmem:[#allocation24_spill] sm:$0xff] %v3204_v45  ;;  %981 = vmatmul.mubr.f32.vlgmr.msra.gmra.mxu1 %v3852_v51  ;;  %2091 = vmatprep.subr.mxu0 %v3000_v5  ;;  %v3871_v57 = vand.u32 4294901760, %v3146_v63  ;;  %v1250_v34 = vand.u32 4294901760, %v3194_v36  ;;  %v3248_v46 = vsub.f32 %v76_v50, %v3204_v45  ;;  %v3263_v36 = vsub.f32 %v75_v56, %v3209_v14 }
  0x93   :  { %v119_v43 = vrot.slane %v3867_v4, %v3866_v35  ;;  %2118 = vmatprep.subr.mxu1 %v3868_v20  ;;  %v3222_v51 = vsub.f32 %v3110_v9, %v3869_v62  ;;  %2092 = vmatpush3.msra.mxu0 %v3017_v49  ;;  %v3870_v35 = vand.u32 4294901760, %v3034_v48  ;;  %v3237_v20 = vand.u32 4294901760, %v91_v1 }
  0x94   :  { %v3235_v37 = vsub.f32 %v3146_v63, %v3871_v57  ;;  %v3239_v62 = vand.u32 4294901760, %v74_v17  ;;  %2093 = vmatprep.subr.mxu0 %v3051_v41  ;;  %v3872_v4 = vand.u32 4294901760, %v3074_v33  ;;  %v1138_v48 = vand.u32 4294901760, %v3202_v31 }
  0x95   :  { %2119 = vmatpush3.msra.mxu1 %v3870_v35  ;;  %v90_v35 = vld [vmem:[#allocation5 + $0x198] sm:$0xff]  ;;  %v3252_v57 = vsub.f32 %v3130_v54, %v3166_v53  ;;  %2094 = vmatpush3.msra.mxu0 %v3026_v7  ;;  %v3874_v33 = vand.u32 4294901760, %v3169_v59  ;;  %v3875_v50 = vand.u32 4294901760, %v3160_v12  ;;  %v73_v54 = vld [vmem:[#allocation5 + $0x110] sm:$0xff]  ;;  %v3270_v41 = vand.u32 4294901760, %v119_v43 }
  0x96   :  { %2120 = vmatprep.subr.mxu1 %v3872_v4  ;;  %2095 = vmatprep.subr.mxu0 %v3079_v26  ;;  %v89_v7 = vld [vmem:[#allocation5 + $0x190] sm:$0xff]  ;;  %v3279_v56 = vsub.f32 %v3155_v47, %v3186_v23  ;;  %v3281_v49 = vand.u32 4294901760, %v115_v19  ;;  %v1257_v26 = vand.u32 4294901760, %v3235_v37  ;;  %v3287_v44 = vand.u32 4294901760, %v90_v35  ;;  %v88_v47 = vld [vmem:[#allocation5 + $0x188] sm:$0xff] }
  0x97   :  { %2121 = vmatpush3.msra.mxu1 %v3873_v25  ;;  %v3260_v4 = vsub.f32 %v3169_v59, %v3874_v33  ;;  %v3268_v31 = vsub.f32 %v3160_v12, %v3875_v50  ;;  %3876 = vst [vmem:[#allocation25_spill] sm:$0xff] %v3270_v41  ;;  %v1145_v25 = vand.u32 4294901760, %v3222_v51  ;;  %2096 = vmatpush3.msra.mxu0 %v3065_v3  ;;  %v3879_v50 = vand.u32 4294901760, %v3102_v21 }
  0x98   :  { %2122 = vmatprep.subr.mxu1 %v3877_v13  ;;  %3878 = vst [vmem:[#allocation32_spill] sm:$0xff] %v3281_v49  ;;  %v3290_v51 = vsub.f32 %v74_v17, %v3239_v62  ;;  %v3880_v13 = vand.u32 4294901760, %v3163_v16  ;;  %2097 = vmatprep.subr.mxu0 %v3112_v11  ;;  %v3299_v21 = vand.u32 4294901760, %v73_v54  ;;  %v3303_v5 = vsub.f32 %v91_v1, %v3237_v20 }
  0x99   :  { %2123 = vmatpush3.msra.mxu1 %v3879_v50  ;;  %v72_v50 = vld [vmem:[#allocation5 + $0x108] sm:$0xff]  ;;  %2098 = vmatpush3.msra.mxu0 %v3114_v55  ;;  %v3881_v17 = vand.u32 4294901760, %v3124_v32  ;;  %v1152_v11 = vand.u32 4294901760, %v3268_v31  ;;  %v3313_v3 = vsub.f32 %v119_v43, %v3270_v41  ;;  %v3883_v37 = vand.u32 4294901760, %v3143_v22  ;;  %v71_v31 = vld [vmem:[#allocation5 + $0x100] sm:$0xff] }
  0x9a   :  { %v3295_v33 = vsub.f32 %v3163_v16, %v3880_v13  ;;  %2124 = vmatprep.subr.mxu1 %v1236_v24  ;;  %v1264_v13 = vand.u32 4294901760, %v3260_v4  ;;  %v3310_v24 = vand.u32 4294901760, %v89_v7  ;;  %2099 = vmatprep.subr.mxu0 %v3127_v42  ;;  %v3884_v1 = vand.u32 4294901760, %v3226_v0 }
  0x9b   :  { %2125 = vmatpush3.msra.mxu1 %v3881_v17  ;;  %v3321_v32 = vand.u32 4294901760, %v88_v47  ;;  %v87_v17 = vld [vmem:[#allocation5 + $0x180] sm:$0xff]  ;;  %v3325_v16 = vsub.f32 %v115_v19, %v3281_v49  ;;  %2100 = vmatpush3.msra.mxu0 %v3116_v10  ;;  %v3329_v22 = vand.u32 4294901760, %v72_v50  ;;  %v3885_v4 = vand.u32 4294901760, %v3252_v57 }
  0x9c   :  { %3882 = vst [vmem:[#allocation36_spill] sm:$0xff] %v3310_v24  ;;  %2126 = vmatprep.subr.mxu1 %v3883_v37  ;;  %v1270_v55 = vsub.f32 %v3226_v0, %v3884_v1  ;;  %v1159_v43 = vand.u32 4294901760, %v3295_v33  ;;  %v3333_v1 = vsub.f32 %v90_v35, %v3287_v44  ;;  %2101 = vmatprep.subr.mxu0 %v3166_v53  ;;  %v3347_v35 = vand.u32 4294901760, %v87_v17 }
  0x9d   :  { %2127 = vmatpush3.msra.mxu1 %v1131_v2  ;;  %v1277_v19 = vsub.f32 %v3252_v57, %v3885_v4  ;;  %v3340_v42 = vsub.f32 %v73_v54, %v3299_v21  ;;  %v3886_v2 = vand.u32 4294901760, %v3197_v40  ;;  %2102 = vmatpush3.msra.mxu0 %v3152_v39  ;;  %v3349_v37 = vand.u32 4294901760, %v71_v31 }
  0x9e   :  { %2128 = vmatprep.subr.mxu1 %v1250_v34  ;;  %v3353_v4 = vsub.f32 %v89_v7, %v3310_v24  ;;  %2103 = vmatprep.subr.mxu0 %v3186_v23  ;;  %v1271_v54 = vand.u32 4294901760, %v1270_v55  ;;  %v3363_v34 = vsub.f32 %v72_v50, %v3329_v22  ;;  %v3888_v7 = vand.u32 4294901760, %v3248_v46 }
  0x9f   :  { %v1165_v33 = vsub.f32 %v3197_v40, %v3886_v2  ;;  %2129 = vmatpush3.msra.mxu1 %v1138_v48  ;;  %v3887_v2 = vand.u32 4294901760, %v3279_v56  ;;  %2104 = vmatpush3.msra.mxu0 %v3204_v45  ;;  %v3889_v39 = vand.u32 4294901760, %v3303_v5 }
  0xa0   :  { %2130 = vmatprep.subr.mxu1 %v1257_v26  ;;  %v1172_v23 = vsub.f32 %v3248_v46, %v3888_v7  ;;  %v3370_v26 = vsub.f32 %v88_v47, %v3321_v32  ;;  %2105 = vmatprep.subr.mxu0 %v3237_v20  ;;  %v3379_v7 = vsub.f32 %v71_v31, %v3349_v37  ;;  %v3891_v47 = vand.u32 4294901760, %v3313_v3 }
  0xa1   :  { %v1284_v10 = vsub.f32 %v3279_v56, %v3887_v2  ;;  %2131 = vmatpush3.msra.mxu1 %v1145_v25  ;;  %v1278_v2 = vand.u32 4294901760, %v1277_v19  ;;  %v1166_v48 = vand.u32 4294901760, %v1165_v33  ;;  %v1291_v25 = vsub.f32 %v3303_v5, %v3889_v39  ;;  %2106 = vmatpush3.msra.mxu0 %v3209_v14 }
  0xa2   :  { %2132 = vmatprep.subr.mxu1 %v1264_v13  ;;  %3890 = vst [vmem:[#allocation37_spill] sm:$0xff] %v3379_v7  ;;  %v1085_v55 = vsub.f32 %v3313_v3, %v3891_v47  ;;  %v3386_v19 = vsub.f32 %v87_v17, %v3347_v35  ;;  %2107 = vmatprep.subr.mxu0 %v3287_v44  ;;  %v3893_v33 = vand.u32 4294901760, %v3263_v36  ;;  %v3894_v31 = vand.u32 4294901760, %v3325_v16 }
  0xa3   :  { %2133 = vmatpush3.msra.mxu1 %v1152_v11  ;;  %v1285_v39 = vand.u32 4294901760, %v1284_v10  ;;  %2108 = vmatpush3.msra.mxu0 %v3239_v62  ;;  %v1173_v47 = vand.u32 4294901760, %v1172_v23  ;;  %v3895_v17 = vand.u32 4294901760, %v3333_v1  ;;  %v3733_v14 = vand.u32 4294901760, %v3379_v7 }
  0xa4   :  { %3892 = vst [vmem:[#allocation38_spill] sm:$0xff] %v3386_v19  ;;  %2134 = vmatprep.subr.mxu1 %v1271_v54  ;;  %v1179_v11 = vsub.f32 %v3263_v36, %v3893_v33  ;;  %v1091_v50 = vsub.f32 %v3325_v16, %v3894_v31  ;;  %2109 = vmatprep.subr.mxu0 %v3310_v24  ;;  %v1292_v54 = vand.u32 4294901760, %v1291_v25  ;;  %v3896_v33 = vand.u32 4294901760, %v3290_v51 }
  0xa5   :  { %2135 = vmatpush3.msra.mxu1 %v1159_v43  ;;  %v1298_v13 = vsub.f32 %v3333_v1, %v3895_v17  ;;  %2110 = vmatpush3.msra.mxu0 %v3299_v21  ;;  %v1086_v23 = vand.u32 4294901760, %v1085_v55  ;;  %v3897_v43 = vand.u32 4294901760, %v3353_v4  ;;  %v3734_v10 = vand.u32 4294901760, %v3386_v19 }
  0xa6   :  { %2136 = vmatprep.subr.mxu1 %v1278_v2  ;;  %v1186_v31 = vsub.f32 %v3290_v51, %v3896_v33  ;;  %2111 = vmatprep.subr.mxu0 %v3321_v32  ;;  %v1180_v2 = vand.u32 4294901760, %v1179_v11  ;;  %v1092_v25 = vand.u32 4294901760, %v1091_v50  ;;  %v3898_v24 = vand.u32 4294901760, %v3340_v42 }
  0xa7   :  { %2137 = vmatpush3.msra.mxu1 %v1166_v48  ;;  %v1305_v17 = vsub.f32 %v3353_v4, %v3897_v43  ;;  %2112 = vmatpush3.msra.mxu0 %v3329_v22  ;;  %v1299_v48 = vand.u32 4294901760, %v1298_v13  ;;  %v3899_v55 = vand.u32 4294901760, %v3370_v26  ;;  %v3900_v50 = vand.u32 4294901760, %v3363_v34 }
  0xa8   :  { %2138 = vmatprep.subr.mxu1 %v1285_v39  ;;  %v1193_v33 = vsub.f32 %v3340_v42, %v3898_v24  ;;  %2113 = vmatprep.subr.mxu0 %v3347_v35  ;;  %v1187_v39 = vand.u32 4294901760, %v1186_v31  ;;  %v1319_v13 = vsub.f32 %v3386_v19, %v3734_v10  ;;  %v3918_v10 = vld [vmem:[#allocation31_spill] sm:$0xff] }
  0xa9   :  { %2139 = vmatpush3.msra.mxu1 %v1173_v47  ;;  %v1312_v43 = vsub.f32 %v3370_v26, %v3899_v55  ;;  %v1200_v11 = vsub.f32 %v3363_v34, %v3900_v50  ;;  %2114 = vmatpush3.msra.mxu0 %v3349_v37  ;;  %v1306_v24 = vand.u32 4294901760, %v1305_v17  ;;  %v3904_v55 = vld [vmem:[#allocation13_spill] sm:$0xff]  ;;  %v3907_v50 = vld [vmem:[#allocation14_spill] sm:$0xff] }
  0xaa   :  { %2140 = vmatprep.subr.mxu1 %v1292_v54  ;;  %1087 = vmatprep.mubr.f32.mxu0 %v1086_v23  ;;  %v1194_v47 = vand.u32 4294901760, %v1193_v33  ;;  %v1207_v54 = vsub.f32 %v3379_v7, %v3733_v14  ;;  %v1320_v17 = vand.u32 4294901760, %v1319_v13  ;;  %v3902_v33 = vld [vmem:[#allocation21_spill] sm:$0xff]  ;;  %v3917_v14 = vld [vmem:[#allocation22_spill] sm:$0xff] }
  0xab   :  { %2141 = vmatpush3.msra.mxu1 %v1180_v2  ;;  %1093 = vmatmul.mubr.f32.vlgmr.msra.gmra.mxu0 %v1092_v25  ;;  %v1313_v31 = vand.u32 4294901760, %v1312_v43  ;;  %v1201_v23 = vand.u32 4294901760, %v1200_v11  ;;  %v3901_v25 = vld [vmem:[#allocation12_spill] sm:$0xff]  ;;  %v3905_v43 = vld [vmem:[#allocation30_spill] sm:$0xff]  ;;  %v3910_v13 = vld [vmem:[#allocation17_spill] sm:$0xff] }
  0xac   :  { %2142 = vmatprep.subr.mxu1 %v1299_v48  ;;  %2153 = vmatprep.subr.mxu0 %v2982_v6  ;;  %v1208_v2 = vand.u32 4294901760, %v1207_v54  ;;  %v3903_v48 = vld [vmem:[#allocation27_spill] sm:$0xff]  ;;  %v3908_v11 = vld [vmem:[#allocation16_spill] sm:$0xff]  ;;  %v3912_v54 = vld [vmem:[#allocation18_spill] sm:$0xff] }
  0xad   :  { %2143 = vmatpush3.msra.mxu1 %v1187_v39  ;;  %2154 = vmatpush3.msra.mxu0 %v2969_v38  ;;  %v3906_v39 = vld [vmem:[#allocation15_spill] sm:$0xff] }
  0xae   :  { %2144 = vmatprep.subr.mxu1 %v1306_v24  ;;  %2155 = vmatprep.subr.mxu0 %v2993_v29  ;;  %v3909_v24 = vld [vmem:[#allocation23_spill] sm:$0xff] }
  0xaf   :  { %2145 = vmatpush3.msra.mxu1 %v1194_v47  ;;  %2156 = vmatpush3.msra.mxu0 %v2977_v28  ;;  %v3911_v47 = vld [vmem:[#allocation19_spill] sm:$0xff] }
  0xb0   :  { %2146 = vmatprep.subr.mxu1 %v1313_v31  ;;  %2157 = vmatprep.subr.mxu0 %v3004_v61  ;;  %v3913_v31 = vld [vmem:[#allocation26_spill] sm:$0xff] }
  0xb1   :  { %2147 = vmatpush3.msra.mxu1 %v1201_v23  ;;  %2158 = vmatpush3.msra.mxu0 %v3010_v18  ;;  %v3914_v23 = vld [vmem:[#allocation20_spill] sm:$0xff] }
  0xb2   :  { %2148 = vmatprep.subr.mxu1 %v1320_v17  ;;  %2159 = vmatprep.subr.mxu0 %v3038_v8  ;;  %v3915_v17 = vld [vmem:[#allocation28_spill] sm:$0xff] }
  0xb3   :  { %2149 = vmatpush3.msra.mxu1 %v1208_v2  ;;  %1323 = vmatprep.mubr.f32.mxu1 %v3270_v41  ;;  %v3916_v2 = vld [vmem:[#allocation29_spill] sm:$0xff] }
  0xb4   :  { %2160 = vmatpush3.msra.mxu0 %v3023_v30  ;;  %1325 = vmatmul.mubr.f32.vlgmr.msra.gmra.mxu1 %v3281_v49  ;;  %v3919_v49 = vld [vmem:[#allocation11_spill] sm:$0xff]  ;;  %v3920_v41 = vld [vmem:[#allocation33_spill] sm:$0xff] }
  0xb5   :  { %2161 = vmatprep.subr.mxu0 %v3041_v52  ;;  %2188 = vmatprep.subr.mxu1 %v2953_v15 }
  0xb6   :  { %2162 = vmatpush3.msra.mxu0 %v3063_v60  ;;  %2189 = vmatpush3.msra.mxu1 %v2948_v58 }
  0xb7   :  { %2163 = vmatprep.subr.mxu0 %v3105_v27  ;;  %2190 = vmatprep.subr.mxu1 %v3901_v25 }
  0xb8   :  { %2164 = vmatpush3.msra.mxu0 %v3902_v33  ;;  %2191 = vmatpush3.msra.mxu1 %v3903_v48 }
  0xb9   :  { %2165 = vmatprep.subr.mxu0 %v3146_v63  ;;  %2192 = vmatprep.subr.mxu1 %v3904_v55 }
  0xba   :  { %2166 = vmatpush3.msra.mxu0 %v3110_v9  ;;  %2193 = vmatpush3.msra.mxu1 %v3905_v43 }
  0xbb   :  { %2167 = vmatprep.subr.mxu0 %v3169_v59  ;;  %2194 = vmatprep.subr.mxu1 %v3906_v39 }
  0xbc   :  { %2168 = vmatpush3.msra.mxu0 %v3160_v12  ;;  %2195 = vmatpush3.msra.mxu1 %v3907_v50 }
  0xbd   :  { %2169 = vmatprep.subr.mxu0 %v3226_v0  ;;  %2196 = vmatprep.subr.mxu1 %v3908_v11 }
  0xbe   :  { %2170 = vmatpush3.msra.mxu0 %v3909_v24  ;;  %2197 = vmatpush3.msra.mxu1 %v3910_v13 }
  0xbf   :  { %2171 = vmatprep.subr.mxu0 %v3252_v57  ;;  %2198 = vmatprep.subr.mxu1 %v3911_v47 }
  0xc0   :  { %2172 = vmatpush3.msra.mxu0 %v3197_v40  ;;  %2199 = vmatpush3.msra.mxu1 %v3912_v54 }
  0xc1   :  { %2173 = vmatprep.subr.mxu0 %v3279_v56  ;;  %2200 = vmatprep.subr.mxu1 %v3913_v31 }
  0xc2   :  { %2174 = vmatpush3.msra.mxu0 %v3248_v46  ;;  %2201 = vmatpush3.msra.mxu1 %v3914_v23 }
  0xc3   :  { %2175 = vmatprep.subr.mxu0 %v3303_v5  ;;  %2202 = vmatprep.subr.mxu1 %v3915_v17 }
  0xc4   :  { %2176 = vmatpush3.msra.mxu0 %v3263_v36  ;;  %2203 = vmatpush3.msra.mxu1 %v3916_v2 }
  0xc5   :  { %2177 = vmatprep.subr.mxu0 %v3333_v1  ;;  %2204 = vmatprep.subr.mxu1 %v3917_v14 }
  0xc6   :  { %2178 = vmatpush3.msra.mxu0 %v3290_v51  ;;  %2205 = vmatpush3.msra.mxu1 %v3918_v10 }
  0xc7   :  { %2179 = vmatprep.subr.mxu0 %v3353_v4  ;;  %2206 = vmatprep.subr.mxu1 %v3166_v53  ;;  %v3921_v53 = vld [vmem:[#allocation34_spill] sm:$0xff] }
  0xc8   :  { %2180 = vmatpush3.msra.mxu0 %v3340_v42  ;;  %2207 = vmatpush3.msra.mxu1 %v3919_v49 }
  0xc9   :  { %2181 = vmatprep.subr.mxu0 %v3370_v26  ;;  %2208 = vmatprep.subr.mxu1 %v3920_v41  ;;  %v3922_v41 = vand.u32 4294901760, %v2982_v6  ;;  %v3927_v6 = vand.u32 4294901760, %v3004_v61  ;;  %v3932_v61 = vand.u32 4294901760, %v3325_v16 }
  0xca   :  { %2182 = vmatpush3.msra.mxu0 %v3363_v34  ;;  %2209 = vmatpush3.msra.mxu1 %v3204_v45  ;;  %v3923_v45 = vand.u32 4294901760, %v2969_v38  ;;  %v3928_v38 = vand.u32 4294901760, %v3010_v18  ;;  %v3934_v18 = vand.u32 4294901760, %v3063_v60  ;;  %v3940_v60 = vand.u32 4294901760, %v3160_v12 }
  0xcb   :  { %2183 = vmatprep.subr.mxu0 %v3386_v19  ;;  %2210 = vmatprep.subr.mxu1 %v3237_v20  ;;  %v3924_v19 = vld [vmem:[#allocation36_spill] sm:$0xff]  ;;  %v3947_v12 = vand.u32 4294901760, %v3303_v5  ;;  %v3951_v5 = vand.u32 4294901760, %v3353_v4 }
  0xcc   :  { %2184 = vmatpush3.msra.mxu0 %v3379_v7  ;;  %1460 = vmatprep.mubr.f32.mxu0 %v3313_v3  ;;  %v3925_v7 = vand.u32 4294901760, %v2993_v29  ;;  %v3929_v29 = vand.u32 4294901760, %v3038_v8  ;;  %v3935_v8 = vand.u32 4294901760, %v3105_v27  ;;  %v3944_v27 = vand.u32 4294901760, %v3197_v40 }
  0xcd   :  { %2211 = vmatpush3.msra.mxu1 %v3921_v53  ;;  %1463 = vmatmul.mubr.f32.vlgmr.msra.gmra.mxu0 %v3325_v16  ;;  %v3926_v53 = vand.u32 4294901760, %v2977_v28  ;;  %v3930_v28 = vand.u32 4294901760, %v3313_v3  ;;  %v3941_v3 = vand.u32 4294901760, %v3226_v0  ;;  %v3948_v16 = vand.u32 4294901760, %v3263_v36 }
  0xce   :  { %2212 = vmatprep.subr.mxu1 %v3287_v44  ;;  %2223 = vmatprep.subr.mxu0 %v3922_v41  ;;  %v3933_v41 = vand.u32 4294901760, %v3041_v52  ;;  %v3937_v52 = vand.u32 4294901760, %v3146_v63  ;;  %v3946_v63 = vand.u32 4294901760, %v3248_v46  ;;  %v3949_v40 = vand.u32 4294901760, %v3333_v1  ;;  %v3952_v46 = vld [vmem:[#allocation35_spill] sm:$0xff]  ;;  %v3958_v1 = vld [vmem:[#allocation38_spill] sm:$0xff] }
  0xcf   :  { %2213 = vmatpush3.msra.mxu1 %v3239_v62  ;;  %2224 = vmatpush3.msra.mxu0 %v3923_v45  ;;  %v3931_v45 = vand.u32 4294901760, %v3023_v30  ;;  %v3936_v30 = vand.u32 4294901760, %v3902_v33  ;;  %v3950_v0 = vand.u32 4294901760, %v3290_v51  ;;  %v3954_v36 = vand.u32 4294901760, %v3370_v26  ;;  %v3957_v51 = vld [vmem:[#allocation24_spill] sm:$0xff] }
  0xd0   :  { %2214 = vmatprep.subr.mxu1 %v3924_v19  ;;  %2225 = vmatprep.subr.mxu0 %v3925_v7  ;;  %v3959_v4 = vand.u32 4294901760, %v3958_v1  ;;  %v3960_v7 = vld [vmem:[#allocation37_spill] sm:$0xff]  ;;  %v3964_v26 = vld [vmem:[#allocation32_spill] sm:$0xff] }
  0xd1   :  { %2215 = vmatpush3.msra.mxu1 %v3299_v21  ;;  %2226 = vmatpush3.msra.mxu0 %v3926_v53  ;;  %v3942_v53 = vand.u32 4294901760, %v3909_v24 }
  0xd2   :  { %2216 = vmatprep.subr.mxu1 %v3321_v32  ;;  %2227 = vmatprep.subr.mxu0 %v3927_v6 }
  0xd3   :  { %2217 = vmatpush3.msra.mxu1 %v3329_v22  ;;  %2228 = vmatpush3.msra.mxu0 %v3928_v38 }
  0xd4   :  { %2218 = vmatprep.subr.mxu1 %v3347_v35  ;;  %2229 = vmatprep.subr.mxu0 %v3929_v29 }
  0xd5   :  { %2219 = vmatpush3.msra.mxu1 %v3349_v37  ;;  %1567 = vmatprep.mubr.f32.mxu1 %v3930_v28 }
  0xd6   :  { %2230 = vmatpush3.msra.mxu0 %v3931_v45  ;;  %1571 = vmatmul.mubr.f32.vlgmr.msra.gmra.mxu1 %v3932_v61 }
  0xd7   :  { %2231 = vmatprep.subr.mxu0 %v3933_v41  ;;  %2258 = vmatprep.subr.mxu1 %v2953_v15  ;;  %v3938_v15 = vand.u32 4294901760, %v3110_v9  ;;  %v3945_v9 = vand.u32 4294901760, %v3279_v56  ;;  %v3955_v56 = vld [vmem:[#allocation33_spill] sm:$0xff] }
  0xd8   :  { %2232 = vmatpush3.msra.mxu0 %v3934_v18  ;;  %2259 = vmatpush3.msra.mxu1 %v2948_v58  ;;  %v3939_v58 = vand.u32 4294901760, %v3169_v59  ;;  %v3943_v59 = vand.u32 4294901760, %v3252_v57  ;;  %v3953_v57 = vand.u32 4294901760, %v3340_v42  ;;  %v3961_v42 = vand.u32 4294901760, %v3960_v7 }
  0xd9   :  { %2233 = vmatprep.subr.mxu0 %v3935_v8  ;;  %2260 = vmatprep.subr.mxu1 %v3901_v25 }
  0xda   :  { %2234 = vmatpush3.msra.mxu0 %v3936_v30  ;;  %2261 = vmatpush3.msra.mxu1 %v3903_v48 }
  0xdb   :  { %2235 = vmatprep.subr.mxu0 %v3937_v52  ;;  %2262 = vmatprep.subr.mxu1 %v3904_v55 }
  0xdc   :  { %2236 = vmatpush3.msra.mxu0 %v3938_v15  ;;  %2263 = vmatpush3.msra.mxu1 %v3905_v43 }
  0xdd   :  { %2237 = vmatprep.subr.mxu0 %v3939_v58  ;;  %2264 = vmatprep.subr.mxu1 %v3906_v39 }
  0xde   :  { %2238 = vmatpush3.msra.mxu0 %v3940_v60  ;;  %2265 = vmatpush3.msra.mxu1 %v3907_v50 }
  0xdf   :  { %2239 = vmatprep.subr.mxu0 %v3941_v3  ;;  %2266 = vmatprep.subr.mxu1 %v3908_v11 }
  0xe0   :  { %2240 = vmatpush3.msra.mxu0 %v3942_v53  ;;  %2267 = vmatpush3.msra.mxu1 %v3910_v13 }
  0xe1   :  { %2241 = vmatprep.subr.mxu0 %v3943_v59  ;;  %2268 = vmatprep.subr.mxu1 %v3911_v47 }
  0xe2   :  { %2242 = vmatpush3.msra.mxu0 %v3944_v27  ;;  %2269 = vmatpush3.msra.mxu1 %v3912_v54 }
  0xe3   :  { %2243 = vmatprep.subr.mxu0 %v3945_v9  ;;  %2270 = vmatprep.subr.mxu1 %v3913_v31 }
  0xe4   :  { %2244 = vmatpush3.msra.mxu0 %v3946_v63  ;;  %2271 = vmatpush3.msra.mxu1 %v3914_v23 }
  0xe5   :  { %2245 = vmatprep.subr.mxu0 %v3947_v12  ;;  %2272 = vmatprep.subr.mxu1 %v3915_v17 }
  0xe6   :  { %2246 = vmatpush3.msra.mxu0 %v3948_v16  ;;  %2273 = vmatpush3.msra.mxu1 %v3916_v2 }
  0xe7   :  { %2247 = vmatprep.subr.mxu0 %v3949_v40  ;;  %2274 = vmatprep.subr.mxu1 %v3917_v14  ;;  %v3956_v14 = vand.u32 4294901760, %v3363_v34 }
  0xe8   :  { %2248 = vmatpush3.msra.mxu0 %v3950_v0  ;;  %2275 = vmatpush3.msra.mxu1 %v3918_v10  ;;  %v3962_v10 = vld [vmem:[#allocation25_spill] sm:$0xff] }
  0xe9   :  { %2249 = vmatprep.subr.mxu0 %v3951_v5  ;;  %2276 = vmatprep.subr.mxu1 %v3952_v46 }
  0xea   :  { %2250 = vmatpush3.msra.mxu0 %v3953_v57  ;;  %2277 = vmatpush3.msra.mxu1 %v3919_v49  ;;  %v3963_v49 = vld [vmem:[#allocation34_spill] sm:$0xff] }
  0xeb   :  { %2251 = vmatprep.subr.mxu0 %v3954_v36  ;;  %2278 = vmatprep.subr.mxu1 %v3955_v56 }
  0xec   :  { %2252 = vmatpush3.msra.mxu0 %v3956_v14  ;;  %2279 = vmatpush3.msra.mxu1 %v3957_v51 }
  0xed   :  { %2253 = vmatprep.subr.mxu0 %v3959_v4  ;;  %2280 = vmatprep.subr.mxu1 %v3237_v20 }
  0xee   :  { %2254 = vmatpush3.msra.mxu0 %v3961_v42  ;;  %1737 = vmatprep.mubr.f32.mxu0 %v3962_v10 }
  0xef   :  { %2281 = vmatpush3.msra.mxu1 %v3963_v49  ;;  %1739 = vmatmul.mubr.f32.vlgmr.msra.gmra.mxu0 %v3964_v26 }
  0xf0   :  { %2282 = vmatprep.subr.mxu1 %v3287_v44  ;;  %1841 = vmatprep.mubr.f32.mxu1 %v3962_v10 }
  0xf1   :  { %2283 = vmatpush3.msra.mxu1 %v3239_v62 }
  0xf2   :  { %2284 = vmatprep.subr.mxu1 %v3924_v19 }
  0xf3   :  { %2285 = vmatpush3.msra.mxu1 %v3299_v21 }
  0xf4   :  { %2286 = vmatprep.subr.mxu1 %v3321_v32 }
  0xf5   :  { %2287 = vmatpush3.msra.mxu1 %v3329_v22 }
  0xf6   :  { %2288 = vmatprep.subr.mxu1 %v3347_v35 }
  0xf7   :  { %2289 = vmatpush3.msra.mxu1 %v3349_v37 }
  0xf8   :  { %1843 = vmatmul.mubr.f32.vlgmr.msra.gmra.mxu1 %v3964_v26 }
 0x108   :  { %v1905_v20 = vpop.f32.mrf.mxu0 }
 0x10a   :  { %v1906_v44 = vpop.f32.mrf.mxu0 }
 0x10b   :  { %v1907_v50 = vadd.f32 %v1906_v44, %v1905_v20 }
 0x10d   :  { %v1940_v34 = vpop.f32.mrf.mxu1 }
 0x10f   :  { %v1941_v33 = vpop.f32.mrf.mxu1 }
 0x110   :  { %v1942_v39 = vadd.f32 %v1941_v33, %v1940_v34 }
 0x112   :  { %v465_v24 = vadd.f32 %v1942_v39, %v1907_v50 }
 0x128   :  { %v1975_v25 = vpop.f32.mrf.mxu0 }
 0x12a   :  { %v1976_v62 = vpop.f32.mrf.mxu0 }
 0x12b   :  { %v1977_v35 = vadd.f32 %v1976_v62, %v1975_v25 }
 0x12d   :  { %v603_v54 = vadd.f32 %v1977_v35, %v465_v24 }
 0x130   :  { %v2010_v48 = vpop.f32.mrf.mxu1 }
 0x132   :  { %v2011_v55 = vpop.f32.mrf.mxu1 }
 0x133   :  { %v2012_v13 = vadd.f32 %v2011_v55, %v2010_v48 }
 0x135   :  { %v711_v17 = vadd.f32 %v2012_v13, %v603_v54 }
 0x149   :  { %v2045_v19 = vpop.f32.mrf.mxu0 }
 0x14b   :  { %v2046_v21 = vpop.f32.mrf.mxu0 }
 0x14c   :  { %v2047_v31 = vadd.f32 %v2046_v21, %v2045_v19 }
 0x14e   :  { %v879_v29 = vadd.f32 %v2047_v31, %v711_v17 }
 0x152   :  { %v2080_v43 = vpop.f32.mrf.mxu1 }
 0x154   :  { %v2081_v22 = vpop.f32.mrf.mxu1 }
 0x155   :  { %v2082_v2 = vadd.f32 %v2081_v22, %v2080_v43 }
 0x157   :  { %v983_v61 = vadd.f32 %v2082_v2, %v879_v29 }
 0x16b   :  { %v2115_v32 = vpop.f32.mrf.mxu0 }
 0x16d   :  { %v2116_v11 = vpop.f32.mrf.mxu0 }
 0x16e   :  { %v2117_v28 = vadd.f32 %v2116_v11, %v2115_v32 }
 0x170   :  { %v1095_v8 = vadd.f32 %v2117_v28, %v983_v61 }
 0x174   :  { %v2150_v37 = vpop.f32.mrf.mxu1 }
 0x176   :  { %v2151_v23 = vpop.f32.mrf.mxu1 }
 0x177   :  { %v2152_v41 = vadd.f32 %v2151_v23, %v2150_v37 }
 0x179   :  { %v1327_v15 = vadd.f32 %v2152_v41, %v1095_v8 }
 0x18d   :  { %v2185_v47 = vpop.f32.mrf.mxu0 }
 0x18f   :  { %v2186_v6 = vpop.f32.mrf.mxu0 }
 0x190   :  { %v2187_v30 = vadd.f32 %v2186_v6, %v2185_v47 }
 0x192   :  { %v1465_v60 = vadd.f32 %v2187_v30, %v1327_v15 }
 0x196   :  { %v2220_v38 = vpop.f32.mrf.mxu1 }
 0x198   :  { %v2221_v18 = vpop.f32.mrf.mxu1 }
 0x199   :  { %v2222_v58 = vadd.f32 %v2221_v18, %v2220_v38 }
 0x19b   :  { %v1573_v59 = vadd.f32 %v2222_v58, %v1465_v60 }
 0x1af   :  { %v2255_v45 = vpop.f32.mrf.mxu0 }
 0x1b1   :  { %v2256_v52 = vpop.f32.mrf.mxu0 }
 0x1b2   :  { %v2257_v3 = vadd.f32 %v2256_v52, %v2255_v45 }
 0x1b4   :  { %v1741_v9 = vadd.f32 %v2257_v3, %v1573_v59 }
 0x1b8   :  { %v2290_v53 = vpop.f32.mrf.mxu1 }
 0x1ba   :  { %v2291_v27 = vpop.f32.mrf.mxu1 }
 0x1bb   :  { %v2292_v63 = vadd.f32 %v2291_v27, %v2290_v53 }
 0x1bd   :  { %v1845_v12 = vadd.f32 %v2292_v63, %v1741_v9 }
 0x1bf   :  { %v1872_v16 = vadd.f32 -5.0, %v1845_v12 }
 0x1c1   :  { %v1849_v40 = vsub.f32 0.0, %v1872_v16 }
 0x1c3   :  { %v1850_v0 = vmul.f32 1.442695, %v1849_v40 }
 0x1c5   :  { %2298 = vpow2.f32 %v1850_v0 }
 0x1d2   :  { %v2299_v5 = vpop.eup %2298 }
 0x1d3   :  { %v1852_v46 = vadd.f32 1.0, %v2299_v5 }
 0x1d5   :  { %2300 = vrcp.f32 %v1852_v46 }
 0x1e2   :  { %v2301_v57 = vpop.eup %2300 }
 0x1e3   :  { %1855 = vst [vmem:[#allocation7] sm:$0x1] %v2301_v57 }
 0x1e4   :  { %2353 = shalt.err (!%p2350_p0)
}
 0x1e5   :  { %1865 = dma.vmem_to_hbm [thread:$0]  %s1863_s1, 16, %s3608_s2, [#allocation4]  }
 0x1e6   :  { %2366 = dma.done.wait [#allocation4], 16  }
 0x1e7   :  { %2367 = vsyncadd [#allocation4], 4294967280 }
 0x1e8   :  { %1869 = vsyncpa [#allocation3], 1 }
 0x1e9   :  { %1870 = vsyncpa [#allocation6], 1 }
 0x1ea   :  { %1871 = vsyncpa [#allocation4], 1 }

</bundles_post_ra>
